<compile_context>
chip_gen: v5e
topology: v5e:2x2
jax: 0.10.0
libtpu: 0.0.40
codegen_flags: <defaults>
</compile_context>

<pallas_src>
import math
import numpy as np
import jax
import jax.numpy as jnp
from jax import lax
from jax.experimental import pallas as pl
from jax.experimental.pallas import tpu as pltpu


# ---------------------------------------------------------------------------
# Parameter / buffer construction (mirrors _SRE_ConvNd.__init__ / _make_weight_index_mat)
# ---------------------------------------------------------------------------
def make_weight_index_mat(kernel_size, sre_k, force_circular=True):
    """Returns (sre_k, KH*KW) float32 band-indicator matrix."""
    H, W = kernel_size
    yy, xx = np.mgrid[0:H, 0:W]
    D = np.sqrt((yy - H // 2) ** 2 + (xx - W // 2) ** 2)  # distance to kernel center
    max_dist = H // 2 + 0.5 if force_circular else D.max()
    num_levels = sre_k + 1 if force_circular else sre_k
    levels = np.linspace(D.min(), max_dist, num=num_levels)
    mats = []
    for i in range(num_levels):
        if i == num_levels - 1:
            if force_circular:
                continue
            idx = (D == levels[i]).astype(np.float32)
        else:
            idx = ((D >= levels[i]) & (D < levels[i + 1])).astype(np.float32)
        mats.append(idx.reshape(-1))
    return np.stack(mats, axis=0).astype(np.float32)  # (sre_k, KH*KW)


def init_sre_conv2d_params(key, in_channels, out_channels, kernel_size, sre_k):
    """Deterministic init matching _SRE_ConvNd.reset_parameters (kaiming-uniform style)."""
    KH, KW = kernel_size
    k_w, k_b = jax.random.split(key)
    fan_in_full = in_channels * KH * KW                 # fan over expanded (Cout,Cin,KH,KW)
    gain = math.sqrt(2.0 / (1.0 + 5.0))                 # leaky_relu gain with a=sqrt(5)
    bound_w = math.sqrt(3.0) * gain / math.sqrt(fan_in_full)
    weight = jax.random.uniform(k_w, (out_channels, in_channels, sre_k), jnp.float32,
                                minval=-bound_w, maxval=bound_w)
    fan_in_bias = in_channels * sre_k                   # fan over compressed weight
    bound_b = 1.0 / math.sqrt(fan_in_bias)
    bias = jax.random.uniform(k_b, (out_channels,), jnp.float32,
                              minval=-bound_b, maxval=bound_b)
    return weight, bias


def _round_up(x, m):
    return (x + m - 1) // m * m


def _cdiv(a, b):
    return (a + b - 1) // b


def _prefer_wide_mxu():
    """True on v6e/v7x-class chips (256-wide MXU); False on v2-v5 (128-wide)."""
    try:
        kind = jax.devices()[0].device_kind.lower()
        return not any(t in kind for t in ("v2", "v3", "v4", "v5"))
    except Exception:
        return True


# ---------------------------------------------------------------------------
# Pallas conv kernel
# ---------------------------------------------------------------------------
def sre_conv2d_forward(x_nchw, weight, bias, idx_mat, kernel_size,
                       padding=(0, 0), stride=(1, 1), dilation=(1, 1), groups=1,
                       compute_dtype=jnp.bfloat16, target_pixels=1024):
    """SRE_Conv2d forward. Supports stride=1, dilation=1, groups=1, padding_mode='zeros'."""
    if tuple(stride) != (1, 1) or tuple(dilation) != (1, 1) or groups != 1:
        raise NotImplementedError(
            "SRE_Conv2d Pallas kernel: only stride=1, dilation=1, groups=1 are supported")
    # TODO(synk): padding_mode 'reflect'/'replicate'/'circular' not implemented (zeros only).

    N, Cin, H, W = x_nchw.shape
    Cout = weight.shape[0]
    KH, KW = kernel_size

    if isinstance(padding, str):
        if padding == "valid":
            ph = pw = 0
        elif padding == "same":
            # TODO(synk): asymmetric 'same' padding for even kernel sizes not handled.
            ph, pw = (KH - 1) // 2, (KW - 1) // 2
        else:
            raise ValueError(f"bad padding string {padding!r}")
    elif isinstance(padding, int):
        ph = pw = padding
    else:
        ph, pw = padding

    H_out = H + 2 * ph - KH + 1
    W_out = W + 2 * pw - KW + 1
    assert H_out >= 1 and W_out >= 1

    # ---- tiling choices --------------------------------------------------------------
    Cin_pad = _round_up(Cin, 8)                # alignment-friendly channel width
    KDIM = KH * KW * Cin_pad                   # im2col contraction (taps x channels)
    KDIM_pad = _round_up(KDIM + 1, 8)          # +1 ones-column for the folded bias

    if Cout <= 64:
        # Small Cout: avoid padding channels to 128 (removes the big HBM write amplification).
        TCOUT = _round_up(Cout, 8)
    elif Cout <= 128:
        TCOUT = 128
    else:
        TCOUT = 256 if _prefer_wide_mxu() else 128      # 256-wide result tile on v6e/v7x
    Cout_pad = _round_up(Cout, TCOUT)
    n_cout = Cout_pad // TCOUT

    TH = max(1, min(H_out, target_pixels // max(W_out, 1)))   # output rows per tile
    n_row = _cdiv(H_out, TH)
    if N == 1 and n_cout == 1 and n_row == 1 and H_out >= 2:
        # Guarantee >=2 parallel grid steps so v7x's two TensorCores both get work.
        TH = _cdiv(H_out, 2)
        n_row = _cdiv(H_out, TH)
    H_out_pad = n_row * TH                    # padded output rows (tail rows computed, sliced off)
    P = TH * W_out                            # matmul M (pixels per tile)

    # ---- weight glue: expand SRE bands -> im2col matmul layout (+ folded bias row) ----
    wfull = jnp.einsum('kw,ock->ocw', idx_mat, weight).reshape(Cout, Cin, KH, KW)
    wfull = jnp.pad(wfull, ((0, Cout_pad - Cout), (0, Cin_pad - Cin), (0, 0), (0, 0)))
    w_mm = jnp.transpose(wfull, (2, 3, 1, 0)).reshape(KDIM, Cout_pad)      # rows = (kh,kw,cin)
    b_row = jnp.pad(bias, (0, Cout_pad - Cout)).reshape(1, Cout_pad)       # folded bias row
    pad_rows = jnp.zeros((KDIM_pad - KDIM - 1, Cout_pad), w_mm.dtype)
    w_mm = jnp.concatenate([w_mm, b_row, pad_rows], axis=0).astype(compute_dtype)

    # ---- input glue: NCHW -> NHWC, zero pad rows/cols/channels ------------------------
    x_nhwc = jnp.transpose(x_nchw, (0, 2, 3, 1))
    H_in_pad = H_out_pad + KH - 1              # enough rows for the last row tile's halo
    W_in_pad = W + 2 * pw
    x_pad = jnp.pad(
        x_nhwc,
        ((0, 0), (ph, H_in_pad - H - ph), (pw, pw), (0, Cin_pad - Cin)),
    ).astype(compute_dtype)

    out_dtype = x_nchw.dtype

    def conv_kernel(x_ref, w_ref, o_ref, patch_ref):
        # x_ref:     (1, H_in_pad, W_in_pad, Cin_pad)   resident per-image (index only on n)
        # w_ref:     (KDIM_pad, TCOUT)
        # o_ref:     (1, TH, W_out, TCOUT)
        # patch_ref: (TH, W_out, KDIM_pad) VMEM scratch, cached across cout tiles
        r = pl.program_id(1)
        c = pl.program_id(2)
        row0 = pl.multiple_of(r * TH, TH)

        @pl.when(c == 0)
        def _build_patch():
            # Per-tap ref slices (no halo-strip value); each tap lands at its column range.
            for kh in range(KH):
                for kw in range(KW):
                    t = kh * KW + kw
                    patch_ref[:, :, t * Cin_pad:(t + 1) * Cin_pad] = (
                        x_ref[0, pl.ds(row0 + kh, TH), kw:kw + W_out, :])
            # ones column (folded bias) followed by explicit zero padding columns
            tail = lax.broadcasted_iota(jnp.int32, (TH, W_out, KDIM_pad - KDIM), 2) == 0
            patch_ref[:, :, KDIM:] = tail.astype(patch_ref.dtype)

        # cheap collapse-leading-dims reshape, then a single MXU matmul (f32 accumulation)
        patch = patch_ref[...].reshape(P, KDIM_pad)
        acc = jnp.dot(patch, w_ref[...], preferred_element_type=jnp.float32)
        o_ref[0] = acc.reshape(TH, W_out, TCOUT).astype(o_ref.dtype)

    # ---- VMEM budget & cost estimate ---------------------------------------------------
    itemsize = jnp.dtype(compute_dtype).itemsize
    out_itemsize = jnp.dtype(out_dtype).itemsize

    def _tile_bytes(sublanes, lanes, isz):
        return _round_up(sublanes, 8) * _round_up(lanes, 128) * isz

    vmem_est = (
        2 * H_in_pad * _tile_bytes(W_in_pad, Cin_pad, itemsize)    # x block (double buffered)
        + 2 * _tile_bytes(KDIM_pad, TCOUT, itemsize)               # weight block
        + 2 * TH * _tile_bytes(W_out, TCOUT, out_itemsize)         # output block
        + TH * _tile_bytes(W_out, KDIM_pad, itemsize)              # patch scratch
    )
    vmem_limit = int(min(max(2 * vmem_est + (4 << 20), 32 << 20), 100 << 20))
    # TODO(synk): on v7x (64 MiB VMEM) single-buffer the resident image block
    #             (pipeline_mode=pl.Buffered(1)) to halve its footprint.

    flops = 2 * N * H_out * W_out * Cout * KH * KW * Cin
    bytes_accessed = (N * H_in_pad * W_in_pad * Cin_pad * itemsize
                      + KDIM_pad * Cout_pad * itemsize
                      + N * H_out_pad * W_out * Cout_pad * out_itemsize)

    out_padded = pl.pallas_call(
        conv_kernel,
        out_shape=jax.ShapeDtypeStruct((N, H_out_pad, W_out, Cout_pad), out_dtype),
        grid=(N, n_row, n_cout),
        in_specs=[
            pl.BlockSpec((1, H_in_pad, W_in_pad, Cin_pad), lambda n, r, c: (n, 0, 0, 0)),
            pl.BlockSpec((KDIM_pad, TCOUT), lambda n, r, c: (0, c)),
        ],
        out_specs=pl.BlockSpec((1, TH, W_out, TCOUT), lambda n, r, c: (n, r, 0, c)),
        scratch_shapes=[pltpu.VMEM((TH, W_out, KDIM_pad), compute_dtype)],
        compiler_params=pltpu.CompilerParams(
            dimension_semantics=("parallel", "parallel", "arbitrary"),
            vmem_limit_bytes=vmem_limit),
        cost_estimate=pl.CostEstimate(flops=flops, transcendentals=0,
                                      bytes_accessed=bytes_accessed),
    )(x_pad, w_mm)

    out = out_padded[:, :H_out, :, :Cout]          # drop row / channel padding
    return jnp.transpose(out, (0, 3, 1, 2))        # back to NCHW


# ---------------------------------------------------------------------------
# Demo / correctness check
# ---------------------------------------------------------------------------
if __name__ == "__main__":
    N, Cin, H, W = 2, 4, 16, 16
    Cout = 8
    kernel_size = (3, 3)
    padding = (1, 1)
    force_circular = True
    sre_k = kernel_size[0] // 2 + 1  # = 2

    key = jax.random.PRNGKey(0)
    k_x, k_p = jax.random.split(key)
    x = jax.random.normal(k_x, (N, Cin, H, W), jnp.float32)

    weight, bias = init_sre_conv2d_params(k_p, Cin, Cout, kernel_size, sre_k)
    idx_mat = jnp.asarray(make_weight_index_mat(kernel_size, sre_k, force_circular))

    wfull_ref = jnp.einsum('kw,ock->ocw', idx_mat, weight).reshape(Cout, Cin, *kernel_size)
    pads = ((padding[0], padding[0]), (padding[1], padding[1]))

    # --- f32 operands --------------------------------------------------------------------
    out = sre_conv2d_forward(x, weight, bias, idx_mat, kernel_size, padding,
                             compute_dtype=jnp.float32)
    out = jax.block_until_ready(out)
    ref = lax.conv_general_dilated(
        x, wfull_ref, window_strides=(1, 1), padding=pads,
        dimension_numbers=('NCHW', 'OIHW', 'NCHW'),
        precision=lax.Precision.HIGHEST,
    ) + bias[None, :, None, None]
    assert out.shape == (N, Cout, H, W)
    err = float(jnp.max(jnp.abs(out - ref)))
    assert err < 1e-2, f"f32 path max abs err {err}"

    # --- bf16 operands (default; v6e/v7x MXU fast path), f32 accumulation ----------------
    out_bf = sre_conv2d_forward(x, weight, bias, idx_mat, kernel_size, padding)
    out_bf = jax.block_until_ready(out_bf)
    x_b = x.astype(jnp.bfloat16).astype(jnp.float32)
    w_b = wfull_ref.astype(jnp.bfloat16).astype(jnp.float32)
    b_b = bias.astype(jnp.bfloat16).astype(jnp.float32)
    ref_bf = lax.conv_general_dilated(
        x_b, w_b, window_strides=(1, 1), padding=pads,
        dimension_numbers=('NCHW', 'OIHW', 'NCHW'),
        precision=lax.Precision.HIGHEST,
    ) + b_b[None, :, None, None]
    err_bf = float(jnp.max(jnp.abs(out_bf - ref_bf)))
    assert err_bf < 3e-2, f"bf16 path max abs err {err_bf}"

    print("KERNEL_OK")
</pallas_src>

<mosaic_0001>
module attributes {stable_mosaic.version = 11 : i64} {
  func.func @conv_kernel(%arg0: i32, %arg1: i32, %arg2: i32, %arg3: memref<1x18x18x8xf32, #tpu.memory_space<vmem>>, %arg4: memref<80x8xf32, #tpu.memory_space<vmem>>, %arg5: memref<1x16x16x8xf32, #tpu.memory_space<vmem>>, %arg6: memref<16x16x80xf32, #tpu.memory_space<vmem>>) attributes {dimension_semantics = [#tpu.dimension_semantics<parallel>, #tpu.dimension_semantics<parallel>, #tpu.dimension_semantics<arbitrary>], iteration_bounds = array<i64: 2, 1, 1>, scalar_prefetch = 0 : i64, scratch_operands = 1 : i64, tpu.core_type = #tpu.core_type<tc>, window_params = [{transform_indices = @transform_0, window_bounds = array<i64: 1, 18, 18, 8>}, {transform_indices = @transform_1, window_bounds = array<i64: 80, 8>}, {transform_indices = @transform_2, window_bounds = array<i64: 1, 16, 16, 8>}]} {
    %c16_i32 = arith.constant 16 : i32
    %0 = arith.muli %arg1, %c16_i32 : i32
    %1 = tpu.assume_multiple %0, 16 : i32
    %c0_i32 = arith.constant 0 : i32
    %2 = arith.cmpi eq, %arg2, %c0_i32 : i32
    %3 = arith.extui %2 : i1 to i32
    %c0_i32_0 = arith.constant 0 : i32
    %4 = arith.cmpi ne, %3, %c0_i32_0 : i32
    scf.if %4 {
      %c0_i32_9 = arith.constant 0 : i32
      %13 = arith.addi %1, %c0_i32_9 : i32
      %c0_10 = arith.constant 0 : index
      %14 = arith.index_cast %13 : i32 to index
      %c0_11 = arith.constant 0 : index
      %c0_12 = arith.constant 0 : index
      %15 = vector.load %arg3[%c0_10, %14, %c0_11, %c0_12] : memref<1x18x18x8xf32, #tpu.memory_space<vmem>>, vector<1x16x16x8xf32>
      %16 = vector.shape_cast %15 : vector<1x16x16x8xf32> to vector<16x16x8xf32>
      %c0_13 = arith.constant 0 : index
      %c0_14 = arith.constant 0 : index
      %c0_15 = arith.constant 0 : index
      %17 = vector.load %arg6[%c0_13, %c0_14, %c0_15] : memref<16x16x80xf32, #tpu.memory_space<vmem>>, vector<16x16x8xf32>
      tpu.vector_store %arg6[%c0_13, %c0_14, %c0_15], %16 {strides = array<i32>} : memref<16x16x80xf32, #tpu.memory_space<vmem>>, vector<16x16x8xf32>,
      %c0_i32_16 = arith.constant 0 : i32
      %18 = arith.addi %1, %c0_i32_16 : i32
      %c0_17 = arith.constant 0 : index
      %19 = arith.index_cast %18 : i32 to index
      %c1 = arith.constant 1 : index
      %c0_18 = arith.constant 0 : index
      %20 = vector.load %arg3[%c0_17, %19, %c1, %c0_18] : memref<1x18x18x8xf32, #tpu.memory_space<vmem>>, vector<1x16x16x8xf32>
      %21 = vector.shape_cast %20 : vector<1x16x16x8xf32> to vector<16x16x8xf32>
      %c0_19 = arith.constant 0 : index
      %c0_20 = arith.constant 0 : index
      %c8 = arith.constant 8 : index
      %22 = vector.load %arg6[%c0_19, %c0_20, %c8] : memref<16x16x80xf32, #tpu.memory_space<vmem>>, vector<16x16x8xf32>
      tpu.vector_store %arg6[%c0_19, %c0_20, %c8], %21 {strides = array<i32>} : memref<16x16x80xf32, #tpu.memory_space<vmem>>, vector<16x16x8xf32>,
      %c0_i32_21 = arith.constant 0 : i32
      %23 = arith.addi %1, %c0_i32_21 : i32
      %c0_22 = arith.constant 0 : index
      %24 = arith.index_cast %23 : i32 to index
      %c2 = arith.constant 2 : index
      %c0_23 = arith.constant 0 : index
      %25 = vector.load %arg3[%c0_22, %24, %c2, %c0_23] : memref<1x18x18x8xf32, #tpu.memory_space<vmem>>, vector<1x16x16x8xf32>
      %26 = vector.shape_cast %25 : vector<1x16x16x8xf32> to vector<16x16x8xf32>
      %c0_24 = arith.constant 0 : index
      %c0_25 = arith.constant 0 : index
      %c16 = arith.constant 16 : index
      %27 = vector.load %arg6[%c0_24, %c0_25, %c16] : memref<16x16x80xf32, #tpu.memory_space<vmem>>, vector<16x16x8xf32>
      tpu.vector_store %arg6[%c0_24, %c0_25, %c16], %26 {strides = array<i32>} : memref<16x16x80xf32, #tpu.memory_space<vmem>>, vector<16x16x8xf32>,
      %c1_i32 = arith.constant 1 : i32
      %28 = arith.addi %1, %c1_i32 : i32
      %c0_26 = arith.constant 0 : index
      %29 = arith.index_cast %28 : i32 to index
      %c0_27 = arith.constant 0 : index
      %c0_28 = arith.constant 0 : index
      %30 = vector.load %arg3[%c0_26, %29, %c0_27, %c0_28] : memref<1x18x18x8xf32, #tpu.memory_space<vmem>>, vector<1x16x16x8xf32>
      %31 = vector.shape_cast %30 : vector<1x16x16x8xf32> to vector<16x16x8xf32>
      %c0_29 = arith.constant 0 : index
      %c0_30 = arith.constant 0 : index
      %c24 = arith.constant 24 : index
      %32 = vector.load %arg6[%c0_29, %c0_30, %c24] : memref<16x16x80xf32, #tpu.memory_space<vmem>>, vector<16x16x8xf32>
      tpu.vector_store %arg6[%c0_29, %c0_30, %c24], %31 {strides = array<i32>} : memref<16x16x80xf32, #tpu.memory_space<vmem>>, vector<16x16x8xf32>,
      %c1_i32_31 = arith.constant 1 : i32
      %33 = arith.addi %1, %c1_i32_31 : i32
      %c0_32 = arith.constant 0 : index
      %34 = arith.index_cast %33 : i32 to index
      %c1_33 = arith.constant 1 : index
      %c0_34 = arith.constant 0 : index
      %35 = vector.load %arg3[%c0_32, %34, %c1_33, %c0_34] : memref<1x18x18x8xf32, #tpu.memory_space<vmem>>, vector<1x16x16x8xf32>
      %36 = vector.shape_cast %35 : vector<1x16x16x8xf32> to vector<16x16x8xf32>
      %c0_35 = arith.constant 0 : index
      %c0_36 = arith.constant 0 : index
      %c32 = arith.constant 32 : index
      %37 = vector.load %arg6[%c0_35, %c0_36, %c32] : memref<16x16x80xf32, #tpu.memory_space<vmem>>, vector<16x16x8xf32>
      tpu.vector_store %arg6[%c0_35, %c0_36, %c32], %36 {strides = array<i32>} : memref<16x16x80xf32, #tpu.memory_space<vmem>>, vector<16x16x8xf32>,
      %c1_i32_37 = arith.constant 1 : i32
      %38 = arith.addi %1, %c1_i32_37 : i32
      %c0_38 = arith.constant 0 : index
      %39 = arith.index_cast %38 : i32 to index
      %c2_39 = arith.constant 2 : index
      %c0_40 = arith.constant 0 : index
      %40 = vector.load %arg3[%c0_38, %39, %c2_39, %c0_40] : memref<1x18x18x8xf32, #tpu.memory_space<vmem>>, vector<1x16x16x8xf32>
      %41 = vector.shape_cast %40 : vector<1x16x16x8xf32> to vector<16x16x8xf32>
      %c0_41 = arith.constant 0 : index
      %c0_42 = arith.constant 0 : index
      %c40 = arith.constant 40 : index
      %42 = vector.load %arg6[%c0_41, %c0_42, %c40] : memref<16x16x80xf32, #tpu.memory_space<vmem>>, vector<16x16x8xf32>
      tpu.vector_store %arg6[%c0_41, %c0_42, %c40], %41 {strides = array<i32>} : memref<16x16x80xf32, #tpu.memory_space<vmem>>, vector<16x16x8xf32>,
      %c2_i32 = arith.constant 2 : i32
      %43 = arith.addi %1, %c2_i32 : i32
      %c0_43 = arith.constant 0 : index
      %44 = arith.index_cast %43 : i32 to index
      %c0_44 = arith.constant 0 : index
      %c0_45 = arith.constant 0 : index
      %45 = vector.load %arg3[%c0_43, %44, %c0_44, %c0_45] : memref<1x18x18x8xf32, #tpu.memory_space<vmem>>, vector<1x16x16x8xf32>
      %46 = vector.shape_cast %45 : vector<1x16x16x8xf32> to vector<16x16x8xf32>
      %c0_46 = arith.constant 0 : index
      %c0_47 = arith.constant 0 : index
      %c48 = arith.constant 48 : index
      %47 = vector.load %arg6[%c0_46, %c0_47, %c48] : memref<16x16x80xf32, #tpu.memory_space<vmem>>, vector<16x16x8xf32>
      tpu.vector_store %arg6[%c0_46, %c0_47, %c48], %46 {strides = array<i32>} : memref<16x16x80xf32, #tpu.memory_space<vmem>>, vector<16x16x8xf32>,
      %c2_i32_48 = arith.constant 2 : i32
      %48 = arith.addi %1, %c2_i32_48 : i32
      %c0_49 = arith.constant 0 : index
      %49 = arith.index_cast %48 : i32 to index
      %c1_50 = arith.constant 1 : index
      %c0_51 = arith.constant 0 : index
      %50 = vector.load %arg3[%c0_49, %49, %c1_50, %c0_51] : memref<1x18x18x8xf32, #tpu.memory_space<vmem>>, vector<1x16x16x8xf32>
      %51 = vector.shape_cast %50 : vector<1x16x16x8xf32> to vector<16x16x8xf32>
      %c0_52 = arith.constant 0 : index
      %c0_53 = arith.constant 0 : index
      %c56 = arith.constant 56 : index
      %52 = vector.load %arg6[%c0_52, %c0_53, %c56] : memref<16x16x80xf32, #tpu.memory_space<vmem>>, vector<16x16x8xf32>
      tpu.vector_store %arg6[%c0_52, %c0_53, %c56], %51 {strides = array<i32>} : memref<16x16x80xf32, #tpu.memory_space<vmem>>, vector<16x16x8xf32>,
      %c2_i32_54 = arith.constant 2 : i32
      %53 = arith.addi %1, %c2_i32_54 : i32
      %c0_55 = arith.constant 0 : index
      %54 = arith.index_cast %53 : i32 to index
      %c2_56 = arith.constant 2 : index
      %c0_57 = arith.constant 0 : index
      %55 = vector.load %arg3[%c0_55, %54, %c2_56, %c0_57] : memref<1x18x18x8xf32, #tpu.memory_space<vmem>>, vector<1x16x16x8xf32>
      %56 = vector.shape_cast %55 : vector<1x16x16x8xf32> to vector<16x16x8xf32>
      %c0_58 = arith.constant 0 : index
      %c0_59 = arith.constant 0 : index
      %c64 = arith.constant 64 : index
      %57 = vector.load %arg6[%c0_58, %c0_59, %c64] : memref<16x16x80xf32, #tpu.memory_space<vmem>>, vector<16x16x8xf32>
      tpu.vector_store %arg6[%c0_58, %c0_59, %c64], %56 {strides = array<i32>} : memref<16x16x80xf32, #tpu.memory_space<vmem>>, vector<16x16x8xf32>,
      %58 = tpu.iota {dimensions = array<i32: 2>} : vector<16x16x8xi32>
      %c0_i32_60 = arith.constant 0 : i32
      %59 = vector.broadcast %c0_i32_60 : i32 to vector<16x16x8xi32>
      %60 = arith.cmpi eq, %58, %59 : vector<16x16x8xi32>
      %61 = arith.extui %60 : vector<16x16x8xi1> to vector<16x16x8xi32>
      %62 = arith.sitofp %61 : vector<16x16x8xi32> to vector<16x16x8xf32>
      %c0_61 = arith.constant 0 : index
      %c0_62 = arith.constant 0 : index
      %c72 = arith.constant 72 : index
      %63 = vector.load %arg6[%c0_61, %c0_62, %c72] : memref<16x16x80xf32, #tpu.memory_space<vmem>>, vector<16x16x8xf32>
      tpu.vector_store %arg6[%c0_61, %c0_62, %c72], %62 {strides = array<i32>} : memref<16x16x80xf32, #tpu.memory_space<vmem>>, vector<16x16x8xf32>,
    } else {
    }
    %c0 = arith.constant 0 : index
    %c0_1 = arith.constant 0 : index
    %c0_2 = arith.constant 0 : index
    %5 = vector.load %arg6[%c0, %c0_1, %c0_2] : memref<16x16x80xf32, #tpu.memory_space<vmem>>, vector<16x16x80xf32>
    %6 = vector.shape_cast %5 : vector<16x16x80xf32> to vector<256x80xf32>
    %c0_3 = arith.constant 0 : index
    %c0_4 = arith.constant 0 : index
    %7 = vector.load %arg4[%c0_3, %c0_4] : memref<80x8xf32, #tpu.memory_space<vmem>>, vector<80x8xf32>
    %cst = arith.constant dense<0.000000e+00> : vector<256x8xf32>
    %8 = tpu.matmul %6, %7, %cst {dimension_numbers = #tpu.dot_dimension_numbers<[1], [0], [0], [1], [0, 0, 1, 1], [], []>} : vector<256x80xf32>, vector<80x8xf32>, vector<256x8xf32> -> vector<256x8xf32>
    %9 = vector.shape_cast %8 : vector<256x8xf32> to vector<16x16x8xf32>
    %c0_5 = arith.constant 0 : index
    %c0_6 = arith.constant 0 : index
    %c0_7 = arith.constant 0 : index
    %c0_8 = arith.constant 0 : index
    %10 = vector.load %arg5[%c0_5, %c0_6, %c0_7, %c0_8] : memref<1x16x16x8xf32, #tpu.memory_space<vmem>>, vector<1x16x16x8xf32>
    %11 = vector.shape_cast %10 : vector<1x16x16x8xf32> to vector<16x16x8xf32>
    %12 = vector.shape_cast %9 : vector<16x16x8xf32> to vector<1x16x16x8xf32>
    tpu.vector_store %arg5[%c0_5, %c0_6, %c0_7, %c0_8], %12 {strides = array<i32>} : memref<1x16x16x8xf32, #tpu.memory_space<vmem>>, vector<1x16x16x8xf32>,
    return
  }
  func.func @transform_0(%arg0: i32, %arg1: i32, %arg2: i32) -> (i32, i32, i32, i32) {
    %c0_i32 = arith.constant 0 : i32
    %c0_i32_0 = arith.constant 0 : i32
    %c0_i32_1 = arith.constant 0 : i32
    %c0_i32_2 = arith.constant 0 : i32
    return %arg0, %c0_i32, %c0_i32_0, %c0_i32_1 : i32, i32, i32, i32
  }
  func.func @transform_1(%arg0: i32, %arg1: i32, %arg2: i32) -> (i32, i32) {
    %c0_i32 = arith.constant 0 : i32
    %c0_i32_0 = arith.constant 0 : i32
    return %c0_i32, %arg2 : i32, i32
  }
  func.func @transform_2(%arg0: i32, %arg1: i32, %arg2: i32) -> (i32, i32, i32, i32) {
    %c0_i32 = arith.constant 0 : i32
    %c0_i32_0 = arith.constant 0 : i32
    return %arg0, %arg1, %c0_i32, %arg2 : i32, i32, i32, i32
  }
}

</mosaic_0001>

<bundles_post_ra>
// kernel: tpu_custom_call.1
= control target key start
LH: loop header
LB: loop body
LE: loop exit
PB: predicated region body
PF: predicated region fallthrough
CT: control target
= control target key end

     0   :  { %s2626_s9 = smov 0   ;;  %s2628_s10 = smov 0   ;;  %s3976_s0 = inlined_call_operand.vmem [shape: f32[2,18,18,8], index: 0, kind: input, shape index: {}]   ;;  %s3977_s1 = inlined_call_operand.vmem [shape: f32[80,8], index: 1, kind: input, shape index: {}]   ;;  %s3978_s2 = inlined_call_operand.vmem [shape: f32[2,16,16,8], index: 2, kind: output, shape index: {}]  }
   0x1   :  { %s2630_s11 = smov 0  }
   0x2 LB: > { %s31_s12 = sadd.s32 1, %s2595_s10  ;;  %p2280_p0 = scmp.ge.s32.totalorder %s2599_s11, 1  ;;  %s2599_s11 = sphi %s2630_s11, %s12_s11   ;;  %s2595_s10 = sphi %s2628_s10, %s4070_s10   ;;  %s2591_s9 = sphi %s2626_s9, %s4069_s9  }
   0x3   : > { %p33_p1 = scmp.ge.s32.totalorder %s31_s12, 2  ;;  %p144_p2 = scmp.lt.s32.totalorder %s2599_s11, 3 }
   0x5   : > { %s4072_s12 = smov (%p33_p1, %s31_s12), 0  ;;  %p145_p3 = pnand %p2280_p0, %p144_p2 }
   0x7   : > { %148 = sbr.rel (%p145_p3) target bundleno = 952 (0x3b8), region = 28 }
   0xc   : > { %p178_p4 = scmp.lt.s32.totalorder %s2591_s9, 1  ;;  %s2601_s17 = smov 8   ;;  %vm240_vm0 = vcmask 64512   ;;  %vm433_vm1 = vcmask 130112   ;;  %vm626_vm2 = vcmask 195712   ;;  %vm822_vm3 = vcmask 261312  }
   0xd   : > { %s2602_s18 = smov 16   ;;  %s2603_s19 = smov 24   ;;  %vm1015_vm4 = vcmask 326912   ;;  %vm1208_vm5 = vcmask 392512   ;;  %vm1404_vm7 = vcmask 458112   ;;  %vm1597_vm8 = vcmask 523712  }
   0xe   : > { %s4074_s9 = smov (!%p178_p4, %s2591_s9), 1  ;;  %s2604_s20 = smov 32   ;;  %vm1790_vm9 = vcmask 589312   ;;  %vm1832_vm10 = vcmask 654912   ;;  %vm1907_vm11 = vcmask 654336  }
   0xf   : > { %s2542_s13 = smul.u32 432, %s4074_s9  ;;  %s2605_s21 = smov 40  }
  0x10   : > { %s2606_s22 = smov 48   ;;  %s2607_s23 = smov 56  }
  0x11   : > { %s2650_s16 = scalar_lea.vmem %s3976_s0, %s2542_s13  ;;  %s2608_s24 = smov 64  }
  0x12   : > { %v2653_v0 = vld [vmem:[%s2650_s16 + $0x19] sm:$0xff]  ;;  %v273_v1 = vld [vmem:[%s2650_s16 + $0x1] sm:$0xff]  ;;  %v2660_v2 = vld [vmem:[%s2650_s16 + $0x31] sm:$0xff]  ;;  %s2610_s25 = smov 72  }
  0x13   : > { %341 = vrot.lane.b32.xlu1 %v2653_v0, %s2601_s17  ;;  %337 = vrot.lane.b32.xlu0 %v273_v1, %s2601_s17  ;;  %v2665_v3 = vld [vmem:[%s2650_s16 + $0x21] sm:$0xff]  ;;  %v274_v4 = vld [vmem:[%s2650_s16 + $0x9] sm:$0xff] }
  0x14   : > { %345 = vrot.lane.b32.xlu2 %v2660_v2, %s2601_s17  ;;  %v2669_v5 = vld [vmem:[%s2650_s16 + $0x39] sm:$0xff]  ;;  %v2677_v6 = vld [vmem:[%s2650_s16 + $0x51] sm:$0xff]  ;;  %v2680_v7 = vld [vmem:[%s2650_s16 + $0x49] sm:$0xff] }
  0x15   : > { %v2683_v8 = vld [vmem:[%s2650_s16 + $0x61] sm:$0xff]  ;;  %v2692_v9 = vld [vmem:[%s2650_s16 + $0x79] sm:$0xff]  ;;  %v2695_v10 = vld [vmem:[%s2650_s16 + $0x69] sm:$0xff] }
  0x16   : > { %v2698_v11 = vld [vmem:[%s2650_s16 + $0x81] sm:$0xff]  ;;  %v2707_v12 = vld [vmem:[%s2650_s16 + $0x99] sm:$0xff]  ;;  %v2710_v13 = vld [vmem:[%s2650_s16 + $0x91] sm:$0xff] }
  0x17   : > { %v2713_v14 = vld [vmem:[%s2650_s16 + $0xa9] sm:$0xff]  ;;  %v2722_v15 = vld [vmem:[%s2650_s16 + $0xc1] sm:$0xff]  ;;  %v2725_v16 = vld [vmem:[%s2650_s16 + $0xb1] sm:$0xff] }
  0x18   : > { %v2728_v17 = vld [vmem:[%s2650_s16 + $0xc9] sm:$0xff]  ;;  %v2737_v18 = vld [vmem:[%s2650_s16 + $0xe1] sm:$0xff]  ;;  %v2740_v19 = vld [vmem:[%s2650_s16 + $0xd9] sm:$0xff] }
  0x19   : > { %v2743_v20 = vld [vmem:[%s2650_s16 + $0xf1] sm:$0xff]  ;;  %v2752_v21 = vld [vmem:[%s2650_s16 + $0x109] sm:$0xff]  ;;  %v2755_v22 = vld [vmem:[%s2650_s16 + $0xf9] sm:$0xff] }
  0x1a   : > { %v2758_v23 = vld [vmem:[%s2650_s16 + $0x111] sm:$0xff]  ;;  %v2767_v24 = vld [vmem:[%s2650_s16 + $0x129] sm:$0xff]  ;;  %v2770_v25 = vld [vmem:[%s2650_s16 + $0x121] sm:$0xff] }
  0x1b   : > { %343 = vrot.lane.b32.xlu1 %v2665_v3, %s2601_s17  ;;  %339 = vrot.lane.b32.xlu0 %v274_v4, %s2601_s17  ;;  %v2773_v26 = vld [vmem:[%s2650_s16 + $0x139] sm:$0xff]  ;;  %v2782_v27 = vld [vmem:[%s2650_s16 + $0x151] sm:$0xff] }
  0x1c   : > { %347 = vrot.lane.b32.xlu2 %v2669_v5, %s2601_s17  ;;  %v2785_v28 = vld [vmem:[%s2650_s16 + $0x141] sm:$0xff]  ;;  %v2788_v29 = vld [vmem:[%s2650_s16 + $0x159] sm:$0xff]  ;;  %v2795_v30 = vld [vmem:[%s2650_s16 + $0x30] sm:$0xff] }
  0x1d   : > { %4009 = vst [vmem:[#allocation3_spill] sm:$0xff] %v2788_v29  ;;  %v2802_v31 = vld [vmem:[%s2650_s16 + $0x171] sm:$0xff]  ;;  %v2805_v32 = vld [vmem:[%s2650_s16 + $0x169] sm:$0xff]  ;;  %v208_v36 = vld [vmem:[%s2650_s16] sm:$0xff] }
  0x1e   : > { %245 = vst.msk [vmem:[#allocation2 + $0x20] sm:$0xff] %vm240_vm0, %v2795_v30  ;;  %v466_v33 = vld [vmem:[%s2650_s16 + $0x2] sm:$0xff]  ;;  %v2813_v34 = vld [vmem:[%s2650_s16 + $0x38] sm:$0xff]  ;;  %v467_v38 = vld [vmem:[%s2650_s16 + $0xa] sm:$0xff] }
  0x1f   : > { %4010 = vst [vmem:[#allocation4_spill] sm:$0xff] %v2802_v31  ;;  %v2819_v35 = vld [vmem:[%s2650_s16 + $0x18] sm:$0xff]  ;;  %v2830_v39 = vld [vmem:[%s2650_s16 + $0x22] sm:$0xff]  ;;  %v2857_v46 = vld [vmem:[%s2650_s16 + $0x4a] sm:$0xff] }
  0x20   : > { %4011 = vst [vmem:[#allocation5_spill] sm:$0xff] %v2805_v32  ;;  %v2826_v37 = vld [vmem:[%s2650_s16 + $0x1a] sm:$0xff]  ;;  %v209_v42 = vld [vmem:[%s2650_s16 + $0x8] sm:$0xff]  ;;  %v2853_v45 = vld [vmem:[%s2650_s16 + $0x32] sm:$0xff] }
  0x21   : > { %246 = vst.msk [vmem:[#allocation2 + $0x28] sm:$0xff] %vm240_vm0, %v2813_v34  ;;  %v2836_v40 = vld [vmem:[%s2650_s16 + $0x60] sm:$0xff]  ;;  %v2871_v48 = vld [vmem:[%s2650_s16 + $0x50] sm:$0xff]  ;;  %v2874_v49 = vld [vmem:[%s2650_s16 + $0x48] sm:$0xff] }
  0x22   : > { %243 = vst.msk [vmem:[#allocation2 + $0x10] sm:$0xff] %vm240_vm0, %v2819_v35  ;;  %v2843_v41 = vld [vmem:[%s2650_s16 + $0x20] sm:$0xff]  ;;  %v2883_v52 = vld [vmem:[%s2650_s16 + $0x52] sm:$0xff]  ;;  %v2888_v53 = vld [vmem:[%s2650_s16 + $0x6a] sm:$0xff] }
  0x23   : > { %351 = vrot.lane.b32.xlu1 %v2677_v6, %s2601_s17  ;;  %349 = vrot.lane.b32.xlu0 %v2680_v7, %s2601_s17  ;;  %241 = vst.msk [vmem:[#allocation2] sm:$0xff] %vm240_vm0, %v208_v36  ;;  %v2850_v44 = vld [vmem:[%s2650_s16 + $0x3a] sm:$0xff]  ;;  %v2880_v51 = vld [vmem:[%s2650_s16 + $0x62] sm:$0xff] }
  0x24   : > { %353 = vrot.lane.b32.xlu2 %v2683_v8, %s2601_s17  ;;  %4012 = vst [vmem:[#allocation6_spill] sm:$0xff] %v2826_v37  ;;  %v2864_v47 = vld [vmem:[%s2650_s16 + $0x80] sm:$0xff]  ;;  %v2895_v54 = vld [vmem:[%s2650_s16 + $0xa8] sm:$0xff]  ;;  %v2902_v55 = vld [vmem:[%s2650_s16 + $0x78] sm:$0xff] }
  0x25   : > { %4013 = vst [vmem:[#allocation7_spill] sm:$0xff] %v2830_v39  ;;  %v2905_v56 = vld [vmem:[%s2650_s16 + $0x68] sm:$0xff]  ;;  %v2914_v59 = vld [vmem:[%s2650_s16 + $0x7a] sm:$0xff]  ;;  %v2919_v60 = vld [vmem:[%s2650_s16 + $0x92] sm:$0xff] }
  0x26   : > { %249 = vst.msk [vmem:[#allocation2 + $0x40] sm:$0xff] %vm240_vm0, %v2836_v40  ;;  %v2911_v58 = vld [vmem:[%s2650_s16 + $0x82] sm:$0xff]  ;;  %v2934_v4 = vld [vmem:[%s2650_s16 + $0x98] sm:$0xff]  ;;  %v2941_v36 = vld [vmem:[%s2650_s16 + $0xaa] sm:$0xff] }
  0x27   : > { %244 = vst.msk [vmem:[#allocation2 + $0x18] sm:$0xff] %vm240_vm0, %v2843_v41  ;;  %v2926_v61 = vld [vmem:[%s2650_s16 + $0xc8] sm:$0xff] }
  0x28   : > { %4014 = vst [vmem:[#allocation8_spill] sm:$0xff] %v2850_v44 }
  0x29   : > { %4015 = vst [vmem:[#allocation9_spill] sm:$0xff] %v2853_v45 }
  0x2a   : > { %242 = vst.msk [vmem:[#allocation2 + $0x8] sm:$0xff] %vm240_vm0, %v209_v42  ;;  %v2948_v42 = vld [vmem:[%s2650_s16 + $0xb2] sm:$0xff] }
  0x2b   : > { %357 = vrot.lane.b32.xlu1 %v2692_v9, %s2601_s17  ;;  %355 = vrot.lane.b32.xlu0 %v2695_v10, %s2601_s17  ;;  %4016 = vst [vmem:[#allocation10_spill] sm:$0xff] %v2857_v46 }
  0x2c   : > { %359 = vrot.lane.b32.xlu2 %v2698_v11, %s2601_s17  ;;  %252 = vst.msk [vmem:[#allocation2 + $0x58] sm:$0xff] %vm240_vm0, %v2864_v47 }
  0x2d   : > { %248 = vst.msk [vmem:[#allocation2 + $0x38] sm:$0xff] %vm240_vm0, %v2871_v48 }
  0x2e   : > { %4017 = vst [vmem:[#allocation11_spill] sm:$0xff] %v2880_v51 }
  0x2f   : > { %4018 = vst [vmem:[#allocation12_spill] sm:$0xff] %v2883_v52 }
  0x30   : > { %247 = vst.msk [vmem:[#allocation2 + $0x30] sm:$0xff] %vm240_vm0, %v2874_v49 }
  0x31   : > { %4019 = vst [vmem:[#allocation13_spill] sm:$0xff] %v2888_v53 }
  0x32   : > { %255 = vst.msk [vmem:[#allocation2 + $0x70] sm:$0xff] %vm240_vm0, %v2895_v54 }
  0x33   : > { %363 = vrot.lane.b32.xlu1 %v2707_v12, %s2601_s17  ;;  %361 = vrot.lane.b32.xlu0 %v2710_v13, %s2601_s17  ;;  %251 = vst.msk [vmem:[#allocation2 + $0x50] sm:$0xff] %vm240_vm0, %v2902_v55 }
  0x34   : > { %365 = vrot.lane.b32.xlu2 %v2713_v14, %s2601_s17  ;;  %4020 = vst [vmem:[#allocation14_spill] sm:$0xff] %v2911_v58 }
  0x35   : > { %4021 = vst [vmem:[#allocation15_spill] sm:$0xff] %v2914_v59 }
  0x36   : > { %250 = vst.msk [vmem:[#allocation2 + $0x48] sm:$0xff] %vm240_vm0, %v2905_v56 }
  0x37   : > { %4022 = vst [vmem:[#allocation16_spill] sm:$0xff] %v2919_v60 }
  0x38   : > { %258 = vst.msk [vmem:[#allocation2 + $0x88] sm:$0xff] %vm240_vm0, %v2926_v61 }
  0x39   : > { %4023 = vst [vmem:[#allocation17_spill] sm:$0xff] %v2941_v36 }
  0x3a   : > { %4025 = vst [vmem:[#allocation19_spill] sm:$0xff] %v2948_v42 }
  0x3b   : > { %369 = vrot.lane.b32.xlu1 %v2722_v15, %s2601_s17  ;;  %367 = vrot.lane.b32.xlu0 %v2725_v16, %s2601_s17  ;;  %254 = vst.msk [vmem:[#allocation2 + $0x68] sm:$0xff] %vm240_vm0, %v2934_v4 }
  0x3c   : > { %371 = vrot.lane.b32.xlu2 %v2728_v17, %s2601_s17 }
  0x43   : > { %375 = vrot.lane.b32.xlu1 %v2737_v18, %s2601_s17  ;;  %373 = vrot.lane.b32.xlu0 %v2740_v19, %s2601_s17 }
  0x44   : > { %377 = vrot.lane.b32.xlu2 %v2743_v20, %s2601_s17 }
  0x4b   : > { %381 = vrot.lane.b32.xlu1 %v2752_v21, %s2601_s17  ;;  %379 = vrot.lane.b32.xlu0 %v2755_v22, %s2601_s17 }
  0x4c   : > { %383 = vrot.lane.b32.xlu2 %v2758_v23, %s2601_s17 }
  0x53   : > { %387 = vrot.lane.b32.xlu1 %v2767_v24, %s2601_s17  ;;  %385 = vrot.lane.b32.xlu0 %v2770_v25, %s2601_s17 }
  0x54   : > { %389 = vrot.lane.b32.xlu2 %v2773_v26, %s2601_s17 }
  0x5b   : > { %393 = vrot.lane.b32.xlu1 %v2782_v27, %s2601_s17  ;;  %391 = vrot.lane.b32.xlu0 %v2785_v28, %s2601_s17 }
  0x5c   : > { %395 = vrot.lane.b32.xlu2 %v2788_v29, %s2601_s17  ;;  %v3126_v29 = vld [vmem:[%s2650_s16 + $0x168] sm:$0xff] }
  0x5d   : > { %271 = vst.msk [vmem:[#allocation2 + $0xf0] sm:$0xff] %vm240_vm0, %v3126_v29 }
  0x63   : > { %399 = vrot.lane.b32.xlu1 %v2802_v31, %s2601_s17  ;;  %397 = vrot.lane.b32.xlu0 %v2805_v32, %s2601_s17  ;;  %v3122_v31 = vld [vmem:[%s2650_s16 + $0x170] sm:$0xff] }
  0x64   : > { %530 = vrot.lane.b32.xlu2 %v466_v33, %s2602_s18  ;;  %v2938_v33 = vld [vmem:[%s2650_s16 + $0x90] sm:$0xff]  ;;  %272 = vst.msk [vmem:[#allocation2 + $0xf8] sm:$0xff] %vm240_vm0, %v3122_v31 }
  0x65   : > { %253 = vst.msk [vmem:[#allocation2 + $0x60] sm:$0xff] %vm240_vm0, %v2938_v33  ;;  %v3129_v32 = vld [vmem:[%s2650_s16 + $0x172] sm:$0xff] }
  0x6b   : > { %534 = vrot.lane.b32.xlu1 %v2826_v37, %s2602_s18  ;;  %532 = vrot.lane.b32.xlu0 %v467_v38, %s2602_s18  ;;  %v2944_v38 = vld [vmem:[%s2650_s16 + $0x9a] sm:$0xff] }
  0x6c   : > { %536 = vrot.lane.b32.xlu2 %v2830_v39, %s2602_s18  ;;  %4024 = vst [vmem:[#allocation18_spill] sm:$0xff] %v2944_v38  ;;  %v3080_v39 = vld [vmem:[%s2650_s16 + $0x142] sm:$0xff] }
  0x6d   : > { %4037 = vst [vmem:[#allocation31_spill] sm:$0xff] %v3080_v39  ;;  %v3098_v37 = vld [vmem:[%s2650_s16 + $0x140] sm:$0xff] }
  0x6e   : > { %v346_v43 = vpop.permute.xlu2 %345  ;;  %268 = vst.msk [vmem:[#allocation2 + $0xd8] sm:$0xff] %vm240_vm0, %v3098_v37 }
  0x6f   : > { %438 = vst.msk [vmem:[#allocation2 + $0x20] sm:$0xff] %vm433_vm1, %v346_v43  ;;  %v2959_v43 = vld [vmem:[%s2650_s16 + $0xf0] sm:$0xff] }
  0x70   : > { %261 = vst.msk [vmem:[#allocation2 + $0xa0] sm:$0xff] %vm240_vm0, %v2959_v43 }
  0x73   : > { %540 = vrot.lane.b32.xlu1 %v2850_v44, %s2602_s18  ;;  %538 = vrot.lane.b32.xlu0 %v2853_v45, %s2602_s18  ;;  %v3066_v44 = vld [vmem:[%s2650_s16 + $0x128] sm:$0xff]  ;;  %v3094_v45 = vld [vmem:[%s2650_s16 + $0x150] sm:$0xff] }
  0x74   : > { %542 = vrot.lane.b32.xlu2 %v2857_v46, %s2602_s18  ;;  %v3043_v46 = vld [vmem:[%s2650_s16 + $0x10a] sm:$0xff]  ;;  %266 = vst.msk [vmem:[#allocation2 + $0xc8] sm:$0xff] %vm240_vm0, %v3066_v44 }
  0x75   : > { %4033 = vst [vmem:[#allocation27_spill] sm:$0xff] %v3043_v46 }
  0x76   : > { %v348_v50 = vpop.permute.xlu2 %347  ;;  %269 = vst.msk [vmem:[#allocation2 + $0xe0] sm:$0xff] %vm240_vm0, %v3094_v45 }
  0x77   : > { %439 = vst.msk [vmem:[#allocation2 + $0x28] sm:$0xff] %vm433_vm1, %v348_v50 }
  0x7b   : > { %546 = vrot.lane.b32.xlu1 %v2880_v51, %s2602_s18  ;;  %544 = vrot.lane.b32.xlu0 %v2883_v52, %s2602_s18  ;;  %v3033_v51 = vld [vmem:[%s2650_s16 + $0x108] sm:$0xff] }
  0x7c   : > { %548 = vrot.lane.b32.xlu2 %v2888_v53, %s2602_s18  ;;  %v3010_v53 = vld [vmem:[%s2650_s16 + $0xe2] sm:$0xff]  ;;  %263 = vst.msk [vmem:[#allocation2 + $0xb0] sm:$0xff] %vm240_vm0, %v3033_v51 }
  0x7d   : > { %4030 = vst [vmem:[#allocation24_spill] sm:$0xff] %v3010_v53 }
  0x7e   : > { %v354_v57 = vpop.permute.xlu2 %353 }
  0x7f   : > { %442 = vst.msk [vmem:[#allocation2 + $0x40] sm:$0xff] %vm433_vm1, %v354_v57 }
  0x83   : > { %552 = vrot.lane.b32.xlu1 %v2911_v58, %s2602_s18  ;;  %550 = vrot.lane.b32.xlu0 %v2914_v59, %s2602_s18  ;;  %v3000_v58 = vld [vmem:[%s2650_s16 + $0xe0] sm:$0xff] }
  0x84   : > { %554 = vrot.lane.b32.xlu2 %v2919_v60, %s2602_s18  ;;  %v2977_v60 = vld [vmem:[%s2650_s16 + $0xc2] sm:$0xff]  ;;  %260 = vst.msk [vmem:[#allocation2 + $0x98] sm:$0xff] %vm240_vm0, %v3000_v58 }
  0x85   : > { %v342_v62 = vpop.permute.xlu1 %341  ;;  %v338_v63 = vpop.permute.xlu0 %337  ;;  %4027 = vst [vmem:[#allocation21_spill] sm:$0xff] %v2977_v60 }
  0x86   : > { %436 = vst.msk [vmem:[#allocation2 + $0x10] sm:$0xff] %vm433_vm1, %v342_v62  ;;  %v360_v1 = vpop.permute.xlu2 %359 }
  0x87   : > { %434 = vst.msk [vmem:[#allocation2] sm:$0xff] %vm433_vm1, %v338_v63  ;;  %v2967_v63 = vld [vmem:[%s2650_s16 + $0xc0] sm:$0xff] }
  0x88   : > { %445 = vst.msk [vmem:[#allocation2 + $0x58] sm:$0xff] %vm433_vm1, %v360_v1  ;;  %v2971_v1 = vld [vmem:[%s2650_s16 + $0xb0] sm:$0xff] }
  0x89   : > { %257 = vst.msk [vmem:[#allocation2 + $0x80] sm:$0xff] %vm240_vm0, %v2967_v63 }
  0x8a   : > { %256 = vst.msk [vmem:[#allocation2 + $0x78] sm:$0xff] %vm240_vm0, %v2971_v1 }
  0x8b   : > { %558 = vrot.lane.b32.xlu1 %v2941_v36, %s2602_s18  ;;  %556 = vrot.lane.b32.xlu0 %v2944_v38, %s2602_s18  ;;  %v2974_v36 = vld [vmem:[%s2650_s16 + $0xca] sm:$0xff] }
  0x8c   : > { %560 = vrot.lane.b32.xlu2 %v2948_v42, %s2602_s18  ;;  %4026 = vst [vmem:[#allocation20_spill] sm:$0xff] %v2974_v36  ;;  %v2981_v42 = vld [vmem:[%s2650_s16 + $0xda] sm:$0xff] }
  0x8d   : > { %v344_v50 = vpop.permute.xlu1 %343  ;;  %v340_v57 = vpop.permute.xlu0 %339  ;;  %4028 = vst [vmem:[#allocation22_spill] sm:$0xff] %v2981_v42 }
  0x8e   : > { %437 = vst.msk [vmem:[#allocation2 + $0x18] sm:$0xff] %vm433_vm1, %v344_v50  ;;  %v366_v62 = vpop.permute.xlu2 %365  ;;  %v2992_v50 = vld [vmem:[%s2650_s16 + $0x110] sm:$0xff] }
  0x8f   : > { %435 = vst.msk [vmem:[#allocation2 + $0x8] sm:$0xff] %vm433_vm1, %v340_v57 }
  0x90   : > { %448 = vst.msk [vmem:[#allocation2 + $0x70] sm:$0xff] %vm433_vm1, %v366_v62 }
  0x91   : > { %264 = vst.msk [vmem:[#allocation2 + $0xb8] sm:$0xff] %vm240_vm0, %v2992_v50 }
  0x93   : > { %564 = vrot.lane.b32.xlu1 %v2974_v36, %s2602_s18  ;;  %562 = vrot.lane.b32.xlu0 %v2977_v60, %s2602_s18  ;;  %v3004_v36 = vld [vmem:[%s2650_s16 + $0xd8] sm:$0xff] }
  0x94   : > { %566 = vrot.lane.b32.xlu2 %v2981_v42, %s2602_s18  ;;  %v3007_v60 = vld [vmem:[%s2650_s16 + $0xf2] sm:$0xff]  ;;  %v3014_v42 = vld [vmem:[%s2650_s16 + $0xfa] sm:$0xff]  ;;  %259 = vst.msk [vmem:[#allocation2 + $0x90] sm:$0xff] %vm240_vm0, %v3004_v36 }
  0x95   : > { %v352_v57 = vpop.permute.xlu1 %351  ;;  %v350_v62 = vpop.permute.xlu0 %349  ;;  %4029 = vst [vmem:[#allocation23_spill] sm:$0xff] %v3007_v60 }
  0x96   : > { %441 = vst.msk [vmem:[#allocation2 + $0x38] sm:$0xff] %vm433_vm1, %v352_v57  ;;  %v372_v38 = vpop.permute.xlu2 %371  ;;  %v3025_v57 = vld [vmem:[%s2650_s16 + $0x138] sm:$0xff] }
  0x97   : > { %440 = vst.msk [vmem:[#allocation2 + $0x30] sm:$0xff] %vm433_vm1, %v350_v62 }
  0x98   : > { %451 = vst.msk [vmem:[#allocation2 + $0x88] sm:$0xff] %vm433_vm1, %v372_v38 }
  0x99   : > { %4031 = vst [vmem:[#allocation25_spill] sm:$0xff] %v3014_v42 }
  0x9a   : > { %267 = vst.msk [vmem:[#allocation2 + $0xd0] sm:$0xff] %vm240_vm0, %v3025_v57 }
  0x9b   : > { %570 = vrot.lane.b32.xlu1 %v3007_v60, %s2602_s18  ;;  %568 = vrot.lane.b32.xlu0 %v3010_v53, %s2602_s18  ;;  %v3037_v60 = vld [vmem:[%s2650_s16 + $0xf8] sm:$0xff] }
  0x9c   : > { %572 = vrot.lane.b32.xlu2 %v3014_v42, %s2602_s18  ;;  %v3040_v53 = vld [vmem:[%s2650_s16 + $0x112] sm:$0xff]  ;;  %v3047_v42 = vld [vmem:[%s2650_s16 + $0x122] sm:$0xff]  ;;  %262 = vst.msk [vmem:[#allocation2 + $0xa8] sm:$0xff] %vm240_vm0, %v3037_v60 }
  0x9d   : > { %v358_v38 = vpop.permute.xlu1 %357  ;;  %v356_v62 = vpop.permute.xlu0 %355  ;;  %4032 = vst [vmem:[#allocation26_spill] sm:$0xff] %v3040_v53 }
  0x9e   : > { %444 = vst.msk [vmem:[#allocation2 + $0x50] sm:$0xff] %vm433_vm1, %v358_v38  ;;  %v378_v59 = vpop.permute.xlu2 %377  ;;  %v3058_v38 = vld [vmem:[%s2650_s16 + $0x158] sm:$0xff] }
  0x9f   : > { %443 = vst.msk [vmem:[#allocation2 + $0x48] sm:$0xff] %vm433_vm1, %v356_v62 }
  0xa0   : > { %454 = vst.msk [vmem:[#allocation2 + $0xa0] sm:$0xff] %vm433_vm1, %v378_v59 }
  0xa1   : > { %4034 = vst [vmem:[#allocation28_spill] sm:$0xff] %v3047_v42 }
  0xa2   : > { %270 = vst.msk [vmem:[#allocation2 + $0xe8] sm:$0xff] %vm240_vm0, %v3058_v38 }
  0xa3   : > { %576 = vrot.lane.b32.xlu1 %v3040_v53, %s2602_s18  ;;  %574 = vrot.lane.b32.xlu0 %v3043_v46, %s2602_s18  ;;  %v3070_v53 = vld [vmem:[%s2650_s16 + $0x120] sm:$0xff] }
  0xa4   : > { %578 = vrot.lane.b32.xlu2 %v3047_v42, %s2602_s18  ;;  %v3073_v46 = vld [vmem:[%s2650_s16 + $0x13a] sm:$0xff]  ;;  %v3076_v42 = vld [vmem:[%s2650_s16 + $0x12a] sm:$0xff]  ;;  %265 = vst.msk [vmem:[#allocation2 + $0xc0] sm:$0xff] %vm240_vm0, %v3070_v53 }
  0xa5   : > { %v364_v59 = vpop.permute.xlu1 %363  ;;  %v362_v62 = vpop.permute.xlu0 %361  ;;  %4035 = vst [vmem:[#allocation29_spill] sm:$0xff] %v3073_v46 }
  0xa6   : > { %447 = vst.msk [vmem:[#allocation2 + $0x68] sm:$0xff] %vm433_vm1, %v364_v59  ;;  %v384_v52 = vpop.permute.xlu2 %383 }
  0xa7   : > { %446 = vst.msk [vmem:[#allocation2 + $0x60] sm:$0xff] %vm433_vm1, %v362_v62 }
  0xa8   : > { %4036 = vst [vmem:[#allocation30_spill] sm:$0xff] %v3076_v42 }
  0xa9   : > { %457 = vst.msk [vmem:[#allocation2 + $0xb8] sm:$0xff] %vm433_vm1, %v384_v52 }
  0xab   : > { %582 = vrot.lane.b32.xlu1 %v3073_v46, %s2602_s18  ;;  %580 = vrot.lane.b32.xlu0 %v3076_v42, %s2602_s18  ;;  %v3101_v46 = vld [vmem:[%s2650_s16 + $0x15a] sm:$0xff]  ;;  %v3104_v42 = vld [vmem:[%s2650_s16 + $0x152] sm:$0xff] }
  0xac   : > { %584 = vrot.lane.b32.xlu2 %v3080_v39, %s2602_s18  ;;  %v3108_v39 = vld [vmem:[%s2650_s16 + $0x16a] sm:$0xff] }
  0xad   : > { %v370_v59 = vpop.permute.xlu1 %369  ;;  %v368_v52 = vpop.permute.xlu0 %367  ;;  %4038 = vst [vmem:[#allocation32_spill] sm:$0xff] %v3108_v39 }
  0xae   : > { %450 = vst.msk [vmem:[#allocation2 + $0x80] sm:$0xff] %vm433_vm1, %v370_v59  ;;  %v390_v62 = vpop.permute.xlu2 %389 }
  0xaf   : > { %449 = vst.msk [vmem:[#allocation2 + $0x78] sm:$0xff] %vm433_vm1, %v368_v52 }
  0xb0   : > { %460 = vst.msk [vmem:[#allocation2 + $0xd0] sm:$0xff] %vm433_vm1, %v390_v62 }
  0xb3   : > { %588 = vrot.lane.b32.xlu1 %v3101_v46, %s2602_s18  ;;  %586 = vrot.lane.b32.xlu0 %v3104_v42, %s2602_s18 }
  0xb4   : > { %590 = vrot.lane.b32.xlu2 %v3108_v39, %s2602_s18 }
  0xb5   : > { %v376_v59 = vpop.permute.xlu1 %375  ;;  %v374_v52 = vpop.permute.xlu0 %373 }
  0xb6   : > { %453 = vst.msk [vmem:[#allocation2 + $0x98] sm:$0xff] %vm433_vm1, %v376_v59  ;;  %v396_v62 = vpop.permute.xlu2 %395 }
  0xb7   : > { %452 = vst.msk [vmem:[#allocation2 + $0x90] sm:$0xff] %vm433_vm1, %v374_v52 }
  0xb8   : > { %463 = vst.msk [vmem:[#allocation2 + $0xe8] sm:$0xff] %vm433_vm1, %v396_v62 }
  0xbb   : > { %726 = vrot.lane.b32.xlu1 %v2819_v35, %s2603_s19  ;;  %592 = vrot.lane.b32.xlu0 %v3129_v32, %s2602_s18 }
  0xbc   : > { %728 = vrot.lane.b32.xlu2 %v2843_v41, %s2603_s19 }
  0xbd   : > { %v382_v59 = vpop.permute.xlu1 %381  ;;  %v380_v52 = vpop.permute.xlu0 %379 }
  0xbe   : > { %456 = vst.msk [vmem:[#allocation2 + $0xb0] sm:$0xff] %vm433_vm1, %v382_v59  ;;  %v531_v62 = vpop.permute.xlu2 %530 }
  0xbf   : > { %455 = vst.msk [vmem:[#allocation2 + $0xa8] sm:$0xff] %vm433_vm1, %v380_v52 }
  0xc0   : > { %627 = vst.msk [vmem:[#allocation2] sm:$0xff] %vm626_vm2, %v531_v62 }
  0xc3   : > { %732 = vrot.lane.b32.xlu1 %v2813_v34, %s2603_s19  ;;  %730 = vrot.lane.b32.xlu0 %v2795_v30, %s2603_s19 }
  0xc4   : > { %734 = vrot.lane.b32.xlu2 %v2874_v49, %s2603_s19 }
  0xc5   : > { %v388_v35 = vpop.permute.xlu1 %387  ;;  %v386_v41 = vpop.permute.xlu0 %385 }
  0xc6   : > { %459 = vst.msk [vmem:[#allocation2 + $0xc8] sm:$0xff] %vm433_vm1, %v388_v35  ;;  %v537_v39 = vpop.permute.xlu2 %536 }
  0xc7   : > { %458 = vst.msk [vmem:[#allocation2 + $0xc0] sm:$0xff] %vm433_vm1, %v386_v41 }
  0xc8   : > { %630 = vst.msk [vmem:[#allocation2 + $0x18] sm:$0xff] %vm626_vm2, %v537_v39 }
  0xcb   : > { %738 = vrot.lane.b32.xlu1 %v2836_v40, %s2603_s19  ;;  %736 = vrot.lane.b32.xlu0 %v2871_v48, %s2603_s19 }
  0xcc   : > { %740 = vrot.lane.b32.xlu2 %v2905_v56, %s2603_s19 }
  0xcd   : > { %v394_v30 = vpop.permute.xlu1 %393  ;;  %v392_v34 = vpop.permute.xlu0 %391 }
  0xce   : > { %462 = vst.msk [vmem:[#allocation2 + $0xe0] sm:$0xff] %vm433_vm1, %v394_v30  ;;  %v543_v59 = vpop.permute.xlu2 %542 }
  0xcf   : > { %461 = vst.msk [vmem:[#allocation2 + $0xd8] sm:$0xff] %vm433_vm1, %v392_v34 }
  0xd0   : > { %633 = vst.msk [vmem:[#allocation2 + $0x30] sm:$0xff] %vm626_vm2, %v543_v59 }
  0xd3   : > { %744 = vrot.lane.b32.xlu1 %v2864_v47, %s2603_s19  ;;  %742 = vrot.lane.b32.xlu0 %v2902_v55, %s2603_s19 }
  0xd4   : > { %746 = vrot.lane.b32.xlu2 %v2938_v33, %s2603_s19 }
  0xd5   : > { %v400_v39 = vpop.permute.xlu1 %399  ;;  %v398_v40 = vpop.permute.xlu0 %397 }
  0xd6   : > { %465 = vst.msk [vmem:[#allocation2 + $0xf8] sm:$0xff] %vm433_vm1, %v400_v39  ;;  %v549_v52 = vpop.permute.xlu2 %548 }
  0xd7   : > { %464 = vst.msk [vmem:[#allocation2 + $0xf0] sm:$0xff] %vm433_vm1, %v398_v40 }
  0xd8   : > { %636 = vst.msk [vmem:[#allocation2 + $0x48] sm:$0xff] %vm626_vm2, %v549_v52  ;;  %v3226_v52 = vld [vmem:[%s2650_s16 + $0x180] sm:$0xff] }
  0xdb   : > { %750 = vrot.lane.b32.xlu1 %v2895_v54, %s2603_s19  ;;  %748 = vrot.lane.b32.xlu0 %v2934_v4, %s2603_s19 }
  0xdc   : > { %752 = vrot.lane.b32.xlu2 %v2971_v1, %s2603_s19 }
  0xdd   : > { %v535_v47 = vpop.permute.xlu1 %534  ;;  %v533_v62 = vpop.permute.xlu0 %532 }
  0xde   : > { %629 = vst.msk [vmem:[#allocation2 + $0x10] sm:$0xff] %vm626_vm2, %v535_v47  ;;  %v555_v35 = vpop.permute.xlu2 %554  ;;  %v2315_v47 = vld [vmem:[%s2650_s16 + $0x188] sm:$0xff] }
  0xdf   : > { %628 = vst.msk [vmem:[#allocation2 + $0x8] sm:$0xff] %vm626_vm2, %v533_v62 }
  0xe0   : > { %639 = vst.msk [vmem:[#allocation2 + $0x60] sm:$0xff] %vm626_vm2, %v555_v35 }
  0xe3   : > { %756 = vrot.lane.b32.xlu1 %v2926_v61, %s2603_s19  ;;  %754 = vrot.lane.b32.xlu0 %v2967_v63, %s2603_s19 }
  0xe4   : > { %758 = vrot.lane.b32.xlu2 %v3004_v36, %s2603_s19 }
  0xe5   : > { %v541_v54 = vpop.permute.xlu1 %540  ;;  %v539_v41 = vpop.permute.xlu0 %538 }
  0xe6   : > { %632 = vst.msk [vmem:[#allocation2 + $0x28] sm:$0xff] %vm626_vm2, %v541_v54  ;;  %v561_v30 = vpop.permute.xlu2 %560 }
  0xe7   : > { %631 = vst.msk [vmem:[#allocation2 + $0x20] sm:$0xff] %vm626_vm2, %v539_v41 }
  0xe8   : > { %642 = vst.msk [vmem:[#allocation2 + $0x78] sm:$0xff] %vm626_vm2, %v561_v30 }
  0xeb   : > { %762 = vrot.lane.b32.xlu1 %v2959_v43, %s2603_s19  ;;  %760 = vrot.lane.b32.xlu0 %v3000_v58, %s2603_s19 }
  0xec   : > { %764 = vrot.lane.b32.xlu2 %v3037_v60, %s2603_s19 }
  0xed   : > { %v547_v61 = vpop.permute.xlu1 %546  ;;  %v545_v34 = vpop.permute.xlu0 %544 }
  0xee   : > { %635 = vst.msk [vmem:[#allocation2 + $0x40] sm:$0xff] %vm626_vm2, %v547_v61  ;;  %v567_v59 = vpop.permute.xlu2 %566  ;;  %v4039_v61 = vld [vmem:[#allocation5_spill] sm:$0xff] }
  0xef   : > { %634 = vst.msk [vmem:[#allocation2 + $0x38] sm:$0xff] %vm626_vm2, %v545_v34 }
  0xf0   : > { %645 = vst.msk [vmem:[#allocation2 + $0x90] sm:$0xff] %vm626_vm2, %v567_v59 }
  0xf3   : > { %768 = vrot.lane.b32.xlu1 %v2992_v50, %s2603_s19  ;;  %766 = vrot.lane.b32.xlu0 %v3033_v51, %s2603_s19 }
  0xf4   : > { %770 = vrot.lane.b32.xlu2 %v3070_v53, %s2603_s19 }
  0xf5   : > { %v553_v43 = vpop.permute.xlu1 %552  ;;  %v551_v39 = vpop.permute.xlu0 %550 }
  0xf6   : > { %638 = vst.msk [vmem:[#allocation2 + $0x58] sm:$0xff] %vm626_vm2, %v553_v43  ;;  %v573_v40 = vpop.permute.xlu2 %572  ;;  %v3328_v43 = vld [vmem:[%s2650_s16 + $0x189] sm:$0xff] }
  0xf7   : > { %637 = vst.msk [vmem:[#allocation2 + $0x50] sm:$0xff] %vm626_vm2, %v551_v39  ;;  %v3331_v39 = vld [vmem:[%s2650_s16 + $0x181] sm:$0xff] }
  0xf8   : > { %648 = vst.msk [vmem:[#allocation2 + $0xa8] sm:$0xff] %vm626_vm2, %v573_v40  ;;  %v4042_v40 = vld [vmem:[#allocation6_spill] sm:$0xff] }
  0xfb   : > { %774 = vrot.lane.b32.xlu1 %v3025_v57, %s2603_s19  ;;  %772 = vrot.lane.b32.xlu0 %v3066_v44, %s2603_s19 }
  0xfc   : > { %776 = vrot.lane.b32.xlu2 %v3098_v37, %s2603_s19 }
  0xfd   : > { %v559_v51 = vpop.permute.xlu1 %558  ;;  %v557_v53 = vpop.permute.xlu0 %556 }
  0xfe   : > { %641 = vst.msk [vmem:[#allocation2 + $0x70] sm:$0xff] %vm626_vm2, %v559_v51  ;;  %v579_v50 = vpop.permute.xlu2 %578 }
  0xff   : > { %640 = vst.msk [vmem:[#allocation2 + $0x68] sm:$0xff] %vm626_vm2, %v557_v53 }
 0x100   : > { %651 = vst.msk [vmem:[#allocation2 + $0xc0] sm:$0xff] %vm626_vm2, %v579_v50 }
 0x103   : > { %780 = vrot.lane.b32.xlu1 %v3058_v38, %s2603_s19  ;;  %778 = vrot.lane.b32.xlu0 %v3094_v45, %s2603_s19 }
 0x104   : > { %782 = vrot.lane.b32.xlu2 %v3126_v29, %s2603_s19 }
 0x105   : > { %v565_v37 = vpop.permute.xlu1 %564  ;;  %v563_v44 = vpop.permute.xlu0 %562 }
 0x106   : > { %644 = vst.msk [vmem:[#allocation2 + $0x88] sm:$0xff] %vm626_vm2, %v565_v37  ;;  %v585_v57 = vpop.permute.xlu2 %584  ;;  %v4043_v37 = vld [vmem:[#allocation9_spill] sm:$0xff] }
 0x107   : > { %643 = vst.msk [vmem:[#allocation2 + $0x80] sm:$0xff] %vm626_vm2, %v563_v44  ;;  %v4044_v44 = vld [vmem:[#allocation7_spill] sm:$0xff] }
 0x108   : > { %654 = vst.msk [vmem:[#allocation2 + $0xd8] sm:$0xff] %vm626_vm2, %v585_v57  ;;  %v4045_v57 = vld [vmem:[#allocation8_spill] sm:$0xff] }
 0x10b   : > { %786 = vrot.lane.b32.xlu1 %v3226_v52, %s2603_s19  ;;  %784 = vrot.lane.b32.xlu0 %v3122_v31, %s2603_s19 }
 0x10c   : > { %788 = vrot.lane.b32.xlu2 %v2315_v47, %s2603_s19 }
 0x10d   : > { %v571_v62 = vpop.permute.xlu1 %570  ;;  %v569_v35 = vpop.permute.xlu0 %568 }
 0x10e   : > { %647 = vst.msk [vmem:[#allocation2 + $0xa0] sm:$0xff] %vm626_vm2, %v571_v62  ;;  %v591_v54 = vpop.permute.xlu2 %590 }
 0x10f   : > { %646 = vst.msk [vmem:[#allocation2 + $0x98] sm:$0xff] %vm626_vm2, %v569_v35 }
 0x110   : > { %657 = vst.msk [vmem:[#allocation2 + $0xf0] sm:$0xff] %vm626_vm2, %v591_v54  ;;  %v4046_v54 = vld [vmem:[#allocation12_spill] sm:$0xff] }
 0x113   : > { %921 = vrot.lane.b32.xlu1 %v2665_v3, %s2604_s20  ;;  %919 = vrot.lane.b32.xlu0 %v2653_v0, %s2604_s20 }
 0x114   : > { %923 = vrot.lane.b32.xlu2 %v2660_v2, %s2604_s20 }
 0x115   : > { %v577_v31 = vpop.permute.xlu1 %576  ;;  %v575_v41 = vpop.permute.xlu0 %574 }
 0x116   : > { %650 = vst.msk [vmem:[#allocation2 + $0xb8] sm:$0xff] %vm626_vm2, %v577_v31  ;;  %v729_v30 = vpop.permute.xlu2 %728  ;;  %v4047_v31 = vld [vmem:[#allocation10_spill] sm:$0xff] }
 0x117   : > { %649 = vst.msk [vmem:[#allocation2 + $0xb0] sm:$0xff] %vm626_vm2, %v575_v41  ;;  %v4048_v41 = vld [vmem:[#allocation11_spill] sm:$0xff] }
 0x118   : > { %824 = vst.msk [vmem:[#allocation2 + $0x8] sm:$0xff] %vm822_vm3, %v729_v30 }
 0x11b   : > { %927 = vrot.lane.b32.xlu1 %v2680_v7, %s2604_s20  ;;  %925 = vrot.lane.b32.xlu0 %v2669_v5, %s2604_s20 }
 0x11c   : > { %929 = vrot.lane.b32.xlu2 %v2677_v6, %s2604_s20 }
 0x11d   : > { %v583_v0 = vpop.permute.xlu1 %582  ;;  %v581_v2 = vpop.permute.xlu0 %580 }
 0x11e   : > { %653 = vst.msk [vmem:[#allocation2 + $0xd0] sm:$0xff] %vm626_vm2, %v583_v0  ;;  %v735_v3 = vpop.permute.xlu2 %734 }
 0x11f   : > { %652 = vst.msk [vmem:[#allocation2 + $0xc8] sm:$0xff] %vm626_vm2, %v581_v2 }
 0x120   : > { %827 = vst.msk [vmem:[#allocation2 + $0x20] sm:$0xff] %vm822_vm3, %v735_v3  ;;  %v4049_v3 = vld [vmem:[#allocation15_spill] sm:$0xff] }
 0x123   : > { %933 = vrot.lane.b32.xlu1 %v2695_v10, %s2604_s20  ;;  %931 = vrot.lane.b32.xlu0 %v2683_v8, %s2604_s20 }
 0x124   : > { %935 = vrot.lane.b32.xlu2 %v2692_v9, %s2604_s20 }
 0x125   : > { %v589_v5 = vpop.permute.xlu1 %588  ;;  %v587_v6 = vpop.permute.xlu0 %586 }
 0x126   : > { %656 = vst.msk [vmem:[#allocation2 + $0xe8] sm:$0xff] %vm626_vm2, %v589_v5  ;;  %v741_v7 = vpop.permute.xlu2 %740  ;;  %v4050_v5 = vld [vmem:[#allocation13_spill] sm:$0xff] }
 0x127   : > { %655 = vst.msk [vmem:[#allocation2 + $0xe0] sm:$0xff] %vm626_vm2, %v587_v6  ;;  %v4051_v6 = vld [vmem:[#allocation14_spill] sm:$0xff] }
 0x128   : > { %830 = vst.msk [vmem:[#allocation2 + $0x38] sm:$0xff] %vm822_vm3, %v741_v7 }
 0x12b   : > { %939 = vrot.lane.b32.xlu1 %v2710_v13, %s2604_s20  ;;  %937 = vrot.lane.b32.xlu0 %v2698_v11, %s2604_s20 }
 0x12c   : > { %941 = vrot.lane.b32.xlu2 %v2707_v12, %s2604_s20 }
 0x12d   : > { %v727_v8 = vpop.permute.xlu1 %726  ;;  %v593_v9 = vpop.permute.xlu0 %592 }
 0x12e   : > { %823 = vst.msk [vmem:[#allocation2] sm:$0xff] %vm822_vm3, %v727_v8  ;;  %v747_v10 = vpop.permute.xlu2 %746 }
 0x12f   : > { %658 = vst.msk [vmem:[#allocation2 + $0xf8] sm:$0xff] %vm626_vm2, %v593_v9 }
 0x130   : > { %833 = vst.msk [vmem:[#allocation2 + $0x50] sm:$0xff] %vm822_vm3, %v747_v10  ;;  %v4052_v10 = vld [vmem:[#allocation18_spill] sm:$0xff] }
 0x133   : > { %945 = vrot.lane.b32.xlu1 %v2725_v16, %s2604_s20  ;;  %943 = vrot.lane.b32.xlu0 %v2713_v14, %s2604_s20 }
 0x134   : > { %947 = vrot.lane.b32.xlu2 %v2722_v15, %s2604_s20 }
 0x135   : > { %v733_v11 = vpop.permute.xlu1 %732  ;;  %v731_v12 = vpop.permute.xlu0 %730 }
 0x136   : > { %826 = vst.msk [vmem:[#allocation2 + $0x18] sm:$0xff] %vm822_vm3, %v733_v11  ;;  %v753_v13 = vpop.permute.xlu2 %752  ;;  %v4053_v11 = vld [vmem:[#allocation16_spill] sm:$0xff] }
 0x137   : > { %825 = vst.msk [vmem:[#allocation2 + $0x10] sm:$0xff] %vm822_vm3, %v731_v12  ;;  %v4054_v12 = vld [vmem:[#allocation17_spill] sm:$0xff] }
 0x138   : > { %836 = vst.msk [vmem:[#allocation2 + $0x68] sm:$0xff] %vm822_vm3, %v753_v13 }
 0x13b   : > { %951 = vrot.lane.b32.xlu1 %v2740_v19, %s2604_s20  ;;  %949 = vrot.lane.b32.xlu0 %v2728_v17, %s2604_s20 }
 0x13c   : > { %953 = vrot.lane.b32.xlu2 %v2737_v18, %s2604_s20 }
 0x13d   : > { %v739_v14 = vpop.permute.xlu1 %738  ;;  %v737_v15 = vpop.permute.xlu0 %736 }
 0x13e   : > { %829 = vst.msk [vmem:[#allocation2 + $0x30] sm:$0xff] %vm822_vm3, %v739_v14  ;;  %v759_v16 = vpop.permute.xlu2 %758 }
 0x13f   : > { %828 = vst.msk [vmem:[#allocation2 + $0x28] sm:$0xff] %vm822_vm3, %v737_v15 }
 0x140   : > { %839 = vst.msk [vmem:[#allocation2 + $0x80] sm:$0xff] %vm822_vm3, %v759_v16  ;;  %v4055_v16 = vld [vmem:[#allocation21_spill] sm:$0xff] }
 0x143   : > { %957 = vrot.lane.b32.xlu1 %v2755_v22, %s2604_s20  ;;  %955 = vrot.lane.b32.xlu0 %v2743_v20, %s2604_s20 }
 0x144   : > { %959 = vrot.lane.b32.xlu2 %v2752_v21, %s2604_s20 }
 0x145   : > { %v745_v17 = vpop.permute.xlu1 %744  ;;  %v743_v18 = vpop.permute.xlu0 %742 }
 0x146   : > { %832 = vst.msk [vmem:[#allocation2 + $0x48] sm:$0xff] %vm822_vm3, %v745_v17  ;;  %v765_v19 = vpop.permute.xlu2 %764  ;;  %v4056_v17 = vld [vmem:[#allocation19_spill] sm:$0xff] }
 0x147   : > { %831 = vst.msk [vmem:[#allocation2 + $0x40] sm:$0xff] %vm822_vm3, %v743_v18  ;;  %v4057_v18 = vld [vmem:[#allocation20_spill] sm:$0xff] }
 0x148   : > { %842 = vst.msk [vmem:[#allocation2 + $0x98] sm:$0xff] %vm822_vm3, %v765_v19 }
 0x14b   : > { %963 = vrot.lane.b32.xlu1 %v2770_v25, %s2604_s20  ;;  %961 = vrot.lane.b32.xlu0 %v2758_v23, %s2604_s20 }
 0x14c   : > { %965 = vrot.lane.b32.xlu2 %v2767_v24, %s2604_s20 }
 0x14d   : > { %v751_v20 = vpop.permute.xlu1 %750  ;;  %v749_v21 = vpop.permute.xlu0 %748 }
 0x14e   : > { %835 = vst.msk [vmem:[#allocation2 + $0x60] sm:$0xff] %vm822_vm3, %v751_v20  ;;  %v771_v22 = vpop.permute.xlu2 %770 }
 0x14f   : > { %834 = vst.msk [vmem:[#allocation2 + $0x58] sm:$0xff] %vm822_vm3, %v749_v21 }
 0x150   : > { %845 = vst.msk [vmem:[#allocation2 + $0xb0] sm:$0xff] %vm822_vm3, %v771_v22  ;;  %v4058_v22 = vld [vmem:[#allocation24_spill] sm:$0xff] }
 0x153   : > { %969 = vrot.lane.b32.xlu1 %v2785_v28, %s2604_s20  ;;  %967 = vrot.lane.b32.xlu0 %v2773_v26, %s2604_s20  ;;  %v4040_v28 = vld [vmem:[#allocation3_spill] sm:$0xff]  ;;  %v4041_v26 = vld [vmem:[#allocation4_spill] sm:$0xff] }
 0x154   : > { %971 = vrot.lane.b32.xlu2 %v2782_v27, %s2604_s20 }
 0x155   : > { %v757_v23 = vpop.permute.xlu1 %756  ;;  %v755_v24 = vpop.permute.xlu0 %754 }
 0x156   : > { %838 = vst.msk [vmem:[#allocation2 + $0x78] sm:$0xff] %vm822_vm3, %v757_v23  ;;  %v777_v25 = vpop.permute.xlu2 %776  ;;  %v4059_v23 = vld [vmem:[#allocation22_spill] sm:$0xff] }
 0x157   : > { %837 = vst.msk [vmem:[#allocation2 + $0x70] sm:$0xff] %vm822_vm3, %v755_v24  ;;  %v4060_v24 = vld [vmem:[#allocation23_spill] sm:$0xff] }
 0x158   : > { %848 = vst.msk [vmem:[#allocation2 + $0xc8] sm:$0xff] %vm822_vm3, %v777_v25 }
 0x15b   : > { %975 = vrot.lane.b32.xlu1 %v4039_v61, %s2604_s20  ;;  %973 = vrot.lane.b32.xlu0 %v4040_v28, %s2604_s20 }
 0x15c   : > { %977 = vrot.lane.b32.xlu2 %v4041_v26, %s2604_s20  ;;  %v4061_v26 = vld [vmem:[#allocation27_spill] sm:$0xff] }
 0x15d   : > { %v763_v27 = vpop.permute.xlu1 %762  ;;  %v761_v34 = vpop.permute.xlu0 %760 }
 0x15e   : > { %841 = vst.msk [vmem:[#allocation2 + $0x90] sm:$0xff] %vm822_vm3, %v763_v27  ;;  %v783_v59 = vpop.permute.xlu2 %782  ;;  %v4062_v27 = vld [vmem:[#allocation25_spill] sm:$0xff] }
 0x15f   : > { %840 = vst.msk [vmem:[#allocation2 + $0x88] sm:$0xff] %vm822_vm3, %v761_v34  ;;  %v4063_v34 = vld [vmem:[#allocation26_spill] sm:$0xff] }
 0x160   : > { %851 = vst.msk [vmem:[#allocation2 + $0xe0] sm:$0xff] %vm822_vm3, %v783_v59 }
 0x163   : > { %981 = vrot.lane.b32.xlu1 %v3328_v43, %s2604_s20  ;;  %979 = vrot.lane.b32.xlu0 %v3331_v39, %s2604_s20 }
 0x164   : > { %1112 = vrot.lane.b32.xlu2 %v4042_v40, %s2605_s21 }
 0x165   : > { %v769_v51 = vpop.permute.xlu1 %768  ;;  %v767_v53 = vpop.permute.xlu0 %766 }
 0x166   : > { %844 = vst.msk [vmem:[#allocation2 + $0xa8] sm:$0xff] %vm822_vm3, %v769_v51  ;;  %v789_v50 = vpop.permute.xlu2 %788 }
 0x167   : > { %843 = vst.msk [vmem:[#allocation2 + $0xa0] sm:$0xff] %vm822_vm3, %v767_v53  ;;  %v4064_v53 = vld [vmem:[#allocation30_spill] sm:$0xff] }
 0x168   : > { %854 = vst.msk [vmem:[#allocation2 + $0xf8] sm:$0xff] %vm822_vm3, %v789_v50  ;;  %v4065_v50 = vld [vmem:[#allocation28_spill] sm:$0xff] }
 0x16b   : > { %1116 = vrot.lane.b32.xlu1 %v4043_v37, %s2605_s21  ;;  %1114 = vrot.lane.b32.xlu0 %v4044_v44, %s2605_s21  ;;  %v4066_v37 = vld [vmem:[#allocation29_spill] sm:$0xff] }
 0x16c   : > { %1118 = vrot.lane.b32.xlu2 %v4045_v57, %s2605_s21 }
 0x16d   : > { %v775_v47 = vpop.permute.xlu1 %774  ;;  %v773_v62 = vpop.permute.xlu0 %772 }
 0x16e   : > { %847 = vst.msk [vmem:[#allocation2 + $0xc0] sm:$0xff] %vm822_vm3, %v775_v47  ;;  %v924_v35 = vpop.permute.xlu2 %923 }
 0x16f   : > { %846 = vst.msk [vmem:[#allocation2 + $0xb8] sm:$0xff] %vm822_vm3, %v773_v62  ;;  %v4067_v62 = vld [vmem:[#allocation31_spill] sm:$0xff] }
 0x170   : > { %1018 = vst.msk [vmem:[#allocation2 + $0x10] sm:$0xff] %vm1015_vm4, %v924_v35 }
 0x173   : > { %1122 = vrot.lane.b32.xlu1 %v4046_v54, %s2605_s21  ;;  %1120 = vrot.lane.b32.xlu0 %v4047_v31, %s2605_s21 }
 0x174   : > { %1124 = vrot.lane.b32.xlu2 %v4048_v41, %s2605_s21  ;;  %v3425_v41 = vld [vmem:[%s2650_s16 + $0x182] sm:$0xff] }
 0x175   : > { %v781_v30 = vpop.permute.xlu1 %780  ;;  %v779_v0 = vpop.permute.xlu0 %778 }
 0x176   : > { %850 = vst.msk [vmem:[#allocation2 + $0xd8] sm:$0xff] %vm822_vm3, %v781_v30  ;;  %v930_v2 = vpop.permute.xlu2 %929 }
 0x177   : > { %849 = vst.msk [vmem:[#allocation2 + $0xd0] sm:$0xff] %vm822_vm3, %v779_v0 }
 0x178   : > { %1021 = vst.msk [vmem:[#allocation2 + $0x28] sm:$0xff] %vm1015_vm4, %v930_v2  ;;  %v2380_v2 = vld [vmem:[%s2650_s16 + $0x30] sm:$0xff] }
 0x17b   : > { %1128 = vrot.lane.b32.xlu1 %v4049_v3, %s2605_s21  ;;  %1126 = vrot.lane.b32.xlu0 %v4050_v5, %s2605_s21  ;;  %v3437_v3 = vld [vmem:[%s2650_s16 + $0x18a] sm:$0xff] }
 0x17c   : > { %1130 = vrot.lane.b32.xlu2 %v4051_v6, %s2605_s21 }
 0x17d   : > { %v787_v7 = vpop.permute.xlu1 %786  ;;  %v785_v8 = vpop.permute.xlu0 %784 }
 0x17e   : > { %853 = vst.msk [vmem:[#allocation2 + $0xf0] sm:$0xff] %vm822_vm3, %v787_v7  ;;  %v936_v9 = vpop.permute.xlu2 %935 }
 0x17f   : > { %852 = vst.msk [vmem:[#allocation2 + $0xe8] sm:$0xff] %vm822_vm3, %v785_v8  ;;  %v2384_v8 = vld [vmem:[%s2650_s16 + $0x60] sm:$0xff] }
 0x180   : > { %1024 = vst.msk [vmem:[#allocation2 + $0x40] sm:$0xff] %vm1015_vm4, %v936_v9 }
 0x183   : > { %1134 = vrot.lane.b32.xlu1 %v4052_v10, %s2605_s21  ;;  %1132 = vrot.lane.b32.xlu0 %v4053_v11, %s2605_s21 }
 0x184   : > { %1136 = vrot.lane.b32.xlu2 %v4054_v12, %s2605_s21  ;;  %v2387_v12 = vld [vmem:[%s2650_s16 + $0x80] sm:$0xff] }
 0x185   : > { %v922_v13 = vpop.permute.xlu1 %921  ;;  %v920_v14 = vpop.permute.xlu0 %919 }
 0x186   : > { %1017 = vst.msk [vmem:[#allocation2 + $0x8] sm:$0xff] %vm1015_vm4, %v922_v13  ;;  %v942_v15 = vpop.permute.xlu2 %941 }
 0x187   : > { %1016 = vst.msk [vmem:[#allocation2] sm:$0xff] %vm1015_vm4, %v920_v14  ;;  %v2390_v14 = vld [vmem:[%s2650_s16 + $0xa8] sm:$0xff] }
 0x188   : > { %1027 = vst.msk [vmem:[#allocation2 + $0x58] sm:$0xff] %vm1015_vm4, %v942_v15 }
 0x18b   : > { %1140 = vrot.lane.b32.xlu1 %v4055_v16, %s2605_s21  ;;  %1138 = vrot.lane.b32.xlu0 %v4056_v17, %s2605_s21  ;;  %v2393_v16 = vld [vmem:[%s2650_s16 + $0xc8] sm:$0xff] }
 0x18c   : > { %1142 = vrot.lane.b32.xlu2 %v4057_v18, %s2605_s21  ;;  %v2396_v18 = vld [vmem:[%s2650_s16 + $0xf0] sm:$0xff] }
 0x18d   : > { %v928_v19 = vpop.permute.xlu1 %927  ;;  %v926_v20 = vpop.permute.xlu0 %925 }
 0x18e   : > { %1020 = vst.msk [vmem:[#allocation2 + $0x20] sm:$0xff] %vm1015_vm4, %v928_v19  ;;  %v948_v21 = vpop.permute.xlu2 %947 }
 0x18f   : > { %1019 = vst.msk [vmem:[#allocation2 + $0x18] sm:$0xff] %vm1015_vm4, %v926_v20  ;;  %v2428_v20 = vld [vmem:[%s2650_s16 + $0xf1] sm:$0xff] }
 0x190   : > { %1030 = vst.msk [vmem:[#allocation2 + $0x70] sm:$0xff] %vm1015_vm4, %v948_v21  ;;  %v1823_v21 = vlaneseq }
 0x193   : > { %1146 = vrot.lane.b32.xlu1 %v4058_v22, %s2605_s21  ;;  %1144 = vrot.lane.b32.xlu0 %v4059_v23, %s2605_s21  ;;  %v2460_v23 = vld [vmem:[%s2650_s16 + $0xf2] sm:$0xff] }
 0x194   : > { %1148 = vrot.lane.b32.xlu2 %v4060_v24, %s2605_s21  ;;  %v2436_v24 = vld [vmem:[%s2650_s16 + $0x151] sm:$0xff] }
 0x195   : > { %v934_v25 = vpop.permute.xlu1 %933  ;;  %v932_v61 = vpop.permute.xlu0 %931 }
 0x196   : > { %1023 = vst.msk [vmem:[#allocation2 + $0x38] sm:$0xff] %vm1015_vm4, %v934_v25  ;;  %v954_v28 = vpop.permute.xlu2 %953  ;;  %v2468_v25 = vld [vmem:[%s2650_s16 + $0x152] sm:$0xff] }
 0x197   : > { %1022 = vst.msk [vmem:[#allocation2 + $0x30] sm:$0xff] %vm1015_vm4, %v932_v61 }
 0x198   : > { %1033 = vst.msk [vmem:[#allocation2 + $0x88] sm:$0xff] %vm1015_vm4, %v954_v28 }
 0x19b   : > { %1152 = vrot.lane.b32.xlu1 %v4061_v26, %s2605_s21  ;;  %1150 = vrot.lane.b32.xlu0 %v4062_v27, %s2605_s21  ;;  %v2412_v26 = vld [vmem:[%s2650_s16 + $0x31] sm:$0xff]  ;;  %v2609_v27 = vmov 0.0  }
 0x19c   : > { %1154 = vrot.lane.b32.xlu2 %v4063_v34, %s2605_s21 }
 0x19d   : > { %v940_v59 = vpop.permute.xlu1 %939  ;;  %v938_v40 = vpop.permute.xlu0 %937 }
 0x19e   : > { %1026 = vst.msk [vmem:[#allocation2 + $0x50] sm:$0xff] %vm1015_vm4, %v940_v59  ;;  %v960_v51 = vpop.permute.xlu2 %959  ;;  %v2420_v59 = vld [vmem:[%s2650_s16 + $0x91] sm:$0xff] }
 0x19f   : > { %1025 = vst.msk [vmem:[#allocation2 + $0x48] sm:$0xff] %vm1015_vm4, %v938_v40 }
 0x1a0   : > { %1036 = vst.msk [vmem:[#allocation2 + $0xa0] sm:$0xff] %vm1015_vm4, %v960_v51 }
 0x1a3   : > { %1158 = vrot.lane.b32.xlu1 %v4064_v53, %s2605_s21  ;;  %1156 = vrot.lane.b32.xlu0 %v4065_v50, %s2605_s21  ;;  %v2444_v50 = vld [vmem:[%s2650_s16 + $0x32] sm:$0xff] }
 0x1a4   : > { %1160 = vrot.lane.b32.xlu2 %v4066_v37, %s2605_s21  ;;  %v2452_v37 = vld [vmem:[%s2650_s16 + $0x92] sm:$0xff] }
 0x1a5   : > { %v946_v44 = vpop.permute.xlu1 %945  ;;  %v944_v57 = vpop.permute.xlu0 %943 }
 0x1a6   : > { %1029 = vst.msk [vmem:[#allocation2 + $0x68] sm:$0xff] %vm1015_vm4, %v946_v44  ;;  %v966_v47 = vpop.permute.xlu2 %965 }
 0x1a7   : > { %1028 = vst.msk [vmem:[#allocation2 + $0x60] sm:$0xff] %vm1015_vm4, %v944_v57 }
 0x1a8   : > { %1039 = vst.msk [vmem:[#allocation2 + $0xb8] sm:$0xff] %vm1015_vm4, %v966_v47 }
 0x1ab   : > { %1164 = vrot.lane.b32.xlu1 %v3104_v42, %s2605_s21  ;;  %1162 = vrot.lane.b32.xlu0 %v4067_v62, %s2605_s21  ;;  %v4068_v42 = vld [vmem:[#allocation32_spill] sm:$0xff]  ;;  %v2437_v62 = vld [vmem:[%s2650_s16 + $0x159] sm:$0xff] }
 0x1ac   : > { %1166 = vrot.lane.b32.xlu2 %v3101_v46, %s2605_s21 }
 0x1ad   : > { %v952_v35 = vpop.permute.xlu1 %951  ;;  %v950_v54 = vpop.permute.xlu0 %949 }
 0x1ae   : > { %1032 = vst.msk [vmem:[#allocation2 + $0x80] sm:$0xff] %vm1015_vm4, %v952_v35  ;;  %v972_v31 = vpop.permute.xlu2 %971  ;;  %v2429_v35 = vld [vmem:[%s2650_s16 + $0xf9] sm:$0xff] }
 0x1af   : > { %1031 = vst.msk [vmem:[#allocation2 + $0x78] sm:$0xff] %vm1015_vm4, %v950_v54  ;;  %v2461_v54 = vld [vmem:[%s2650_s16 + $0xfa] sm:$0xff] }
 0x1b0   : > { %1042 = vst.msk [vmem:[#allocation2 + $0xd0] sm:$0xff] %vm1015_vm4, %v972_v31 }
 0x1b3   : > { %1170 = vrot.lane.b32.xlu1 %v3129_v32, %s2605_s21  ;;  %1168 = vrot.lane.b32.xlu0 %v4068_v42, %s2605_s21  ;;  %v2381_v32 = vld [vmem:[%s2650_s16 + $0x38] sm:$0xff] }
 0x1b4   : > { %1172 = vrot.lane.b32.xlu2 %v3425_v41, %s2605_s21 }
 0x1b5   : > { %v958_v46 = vpop.permute.xlu1 %957  ;;  %v956_v30 = vpop.permute.xlu0 %955 }
 0x1b6   : > { %1035 = vst.msk [vmem:[#allocation2 + $0x98] sm:$0xff] %vm1015_vm4, %v958_v46  ;;  %v978_v0 = vpop.permute.xlu2 %977  ;;  %v2413_v46 = vld [vmem:[%s2650_s16 + $0x39] sm:$0xff] }
 0x1b7   : > { %1034 = vst.msk [vmem:[#allocation2 + $0x90] sm:$0xff] %vm1015_vm4, %v956_v30  ;;  %v2469_v30 = vld [vmem:[%s2650_s16 + $0x15a] sm:$0xff] }
 0x1b8   : > { %1045 = vst.msk [vmem:[#allocation2 + $0xe8] sm:$0xff] %vm1015_vm4, %v978_v0  ;;  %v2421_v0 = vld [vmem:[%s2650_s16 + $0x99] sm:$0xff] }
 0x1bb   : > { %1308 = vrot.lane.b32.xlu1 %v2380_v2, %s2606_s22  ;;  %1174 = vrot.lane.b32.xlu0 %v3437_v3, %s2605_s21 }
 0x1bc   : > { %1310 = vrot.lane.b32.xlu2 %v2381_v32, %s2606_s22 }
 0x1bd   : > { %v964_v5 = vpop.permute.xlu1 %963  ;;  %v962_v6 = vpop.permute.xlu0 %961 }
 0x1be   : > { %1038 = vst.msk [vmem:[#allocation2 + $0xb0] sm:$0xff] %vm1015_vm4, %v964_v5  ;;  %v1113_v7 = vpop.permute.xlu2 %1112 }
 0x1bf   : > { %1037 = vst.msk [vmem:[#allocation2 + $0xa8] sm:$0xff] %vm1015_vm4, %v962_v6  ;;  %v2398_v6 = vld [vmem:[%s2650_s16 + $0x108] sm:$0xff] }
 0x1c0   : > { %1209 = vst.msk [vmem:[#allocation2] sm:$0xff] %vm1208_vm5, %v1113_v7  ;;  %v2445_v7 = vld [vmem:[%s2650_s16 + $0x3a] sm:$0xff] }
 0x1c3   : > { %1314 = vrot.lane.b32.xlu1 %v2871_v48, %s2606_s22  ;;  %1312 = vrot.lane.b32.xlu0 %v2874_v49, %s2606_s22 }
 0x1c4   : > { %1316 = vrot.lane.b32.xlu2 %v2384_v8, %s2606_s22 }
 0x1c5   : > { %v970_v9 = vpop.permute.xlu1 %969  ;;  %v968_v10 = vpop.permute.xlu0 %967 }
 0x1c6   : > { %1041 = vst.msk [vmem:[#allocation2 + $0xc8] sm:$0xff] %vm1015_vm4, %v970_v9  ;;  %v1119_v11 = vpop.permute.xlu2 %1118 }
 0x1c7   : > { %1040 = vst.msk [vmem:[#allocation2 + $0xc0] sm:$0xff] %vm1015_vm4, %v968_v10 }
 0x1c8   : > { %1212 = vst.msk [vmem:[#allocation2 + $0x18] sm:$0xff] %vm1208_vm5, %v1119_v11  ;;  %v2430_v11 = vld [vmem:[%s2650_s16 + $0x109] sm:$0xff] }
 0x1cb   : > { %1320 = vrot.lane.b32.xlu1 %v2902_v55, %s2606_s22  ;;  %1318 = vrot.lane.b32.xlu0 %v2905_v56, %s2606_s22 }
 0x1cc   : > { %1322 = vrot.lane.b32.xlu2 %v2387_v12, %s2606_s22  ;;  %v2453_v12 = vld [vmem:[%s2650_s16 + $0x9a] sm:$0xff] }
 0x1cd   : > { %v976_v48 = vpop.permute.xlu1 %975  ;;  %v974_v49 = vpop.permute.xlu0 %973 }
 0x1ce   : > { %1044 = vst.msk [vmem:[#allocation2 + $0xe0] sm:$0xff] %vm1015_vm4, %v976_v48  ;;  %v1125_v13 = vpop.permute.xlu2 %1124  ;;  %v2438_v48 = vld [vmem:[%s2650_s16 + $0x169] sm:$0xff] }
 0x1cf   : > { %1043 = vst.msk [vmem:[#allocation2 + $0xd8] sm:$0xff] %vm1015_vm4, %v974_v49 }
 0x1d0   : > { %1215 = vst.msk [vmem:[#allocation2 + $0x30] sm:$0xff] %vm1208_vm5, %v1125_v13 }
 0x1d3   : > { %1326 = vrot.lane.b32.xlu1 %v2934_v4, %s2606_s22  ;;  %1324 = vrot.lane.b32.xlu0 %v2938_v33, %s2606_s22 }
 0x1d4   : > { %1328 = vrot.lane.b32.xlu2 %v2390_v14, %s2606_s22  ;;  %v2470_v14 = vld [vmem:[%s2650_s16 + $0x16a] sm:$0xff] }
 0x1d5   : > { %v982_v55 = vpop.permute.xlu1 %981  ;;  %v980_v56 = vpop.permute.xlu0 %979 }
 0x1d6   : > { %1047 = vst.msk [vmem:[#allocation2 + $0xf8] sm:$0xff] %vm1015_vm4, %v982_v55  ;;  %v1131_v15 = vpop.permute.xlu2 %1130  ;;  %v2462_v55 = vld [vmem:[%s2650_s16 + $0x10a] sm:$0xff] }
 0x1d7   : > { %1046 = vst.msk [vmem:[#allocation2 + $0xf0] sm:$0xff] %vm1015_vm4, %v980_v56  ;;  %v2414_v56 = vld [vmem:[%s2650_s16 + $0x49] sm:$0xff] }
 0x1d8   : > { %1218 = vst.msk [vmem:[#allocation2 + $0x48] sm:$0xff] %vm1208_vm5, %v1131_v15 }
 0x1db   : > { %1332 = vrot.lane.b32.xlu1 %v2967_v63, %s2606_s22  ;;  %1330 = vrot.lane.b32.xlu0 %v2971_v1, %s2606_s22 }
 0x1dc   : > { %1334 = vrot.lane.b32.xlu2 %v2393_v16, %s2606_s22 }
 0x1dd   : > { %v1117_v4 = vpop.permute.xlu1 %1116  ;;  %v1115_v33 = vpop.permute.xlu0 %1114 }
 0x1de   : > { %1211 = vst.msk [vmem:[#allocation2 + $0x10] sm:$0xff] %vm1208_vm5, %v1117_v4  ;;  %v1137_v17 = vpop.permute.xlu2 %1136 }
 0x1df   : > { %1210 = vst.msk [vmem:[#allocation2 + $0x8] sm:$0xff] %vm1208_vm5, %v1115_v33  ;;  %v2399_v33 = vld [vmem:[%s2650_s16 + $0x110] sm:$0xff] }
 0x1e0   : > { %1221 = vst.msk [vmem:[#allocation2 + $0x60] sm:$0xff] %vm1208_vm5, %v1137_v17  ;;  %v2422_v17 = vld [vmem:[%s2650_s16 + $0xa9] sm:$0xff] }
 0x1e3   : > { %1338 = vrot.lane.b32.xlu1 %v3000_v58, %s2606_s22  ;;  %1336 = vrot.lane.b32.xlu0 %v3004_v36, %s2606_s22 }
 0x1e4   : > { %1340 = vrot.lane.b32.xlu2 %v2396_v18, %s2606_s22  ;;  %v2407_v18 = vld [vmem:[%s2650_s16 + $0x170] sm:$0xff] }
 0x1e5   : > { %v1123_v63 = vpop.permute.xlu1 %1122  ;;  %v1121_v1 = vpop.permute.xlu0 %1120 }
 0x1e6   : > { %1214 = vst.msk [vmem:[#allocation2 + $0x28] sm:$0xff] %vm1208_vm5, %v1123_v63  ;;  %v1143_v19 = vpop.permute.xlu2 %1142 }
 0x1e7   : > { %1213 = vst.msk [vmem:[#allocation2 + $0x20] sm:$0xff] %vm1208_vm5, %v1121_v1 }
 0x1e8   : > { %1224 = vst.msk [vmem:[#allocation2 + $0x78] sm:$0xff] %vm1208_vm5, %v1143_v19 }
 0x1eb   : > { %1356 = vrot.lane.b32.xlu1 %v3094_v45, %s2606_s22  ;;  %1342 = vrot.lane.b32.xlu0 %v3037_v60, %s2606_s22  ;;  %v1824_v45 = vand.u32 127, %v1823_v21 }
 0x1ec   : > { %1533 = vrot.lane.b32.xlu2 %v2428_v20, %s2607_s23  ;;  %v2454_v20 = vld [vmem:[%s2650_s16 + $0xaa] sm:$0xff] }
 0x1ed   : > { %v1129_v58 = vpop.permute.xlu1 %1128  ;;  %v1127_v36 = vpop.permute.xlu0 %1126  ;;  %vm1825_vm6 = vcmp.eq.s32.totalorder %v1824_v45, 0  ;;  %v2463_v45 = vld [vmem:[%s2650_s16 + $0x112] sm:$0xff] }
 0x1ee   : > { %1217 = vst.msk [vmem:[#allocation2 + $0x40] sm:$0xff] %vm1208_vm5, %v1129_v58  ;;  %v1149_v22 = vpop.permute.xlu2 %1148  ;;  %v2476_v34 = vsel %vm1825_vm6, 1.0, %v2609_v27  ;;  %v2446_v58 = vld [vmem:[%s2650_s16 + $0x4a] sm:$0xff] }
 0x1ef   : > { %1216 = vst.msk [vmem:[#allocation2 + $0x38] sm:$0xff] %vm1208_vm5, %v1127_v36  ;;  %v2431_v36 = vld [vmem:[%s2650_s16 + $0x111] sm:$0xff] }
 0x1f0   : > { %1227 = vst.msk [vmem:[#allocation2 + $0x90] sm:$0xff] %vm1208_vm5, %v1149_v22 }
 0x1f3   : > { %1726 = vrot.lane.b32.xlu1 %v2460_v23, %s2608_s24  ;;  %1549 = vrot.lane.b32.xlu0 %v2436_v24, %s2607_s23  ;;  %v1906_v24 = vld [vmem:[%s3977_s1 + $0x48] sm:$0xff] }
 0x1f4   : > { %1742 = vrot.lane.b32.xlu2 %v2468_v25, %s2608_s24  ;;  %v2439_v25 = vld [vmem:[%s2650_s16 + $0x171] sm:$0xff]  ;;  %2512 = vmatpush.msra.mxu1 %v1906_v24 }
 0x1f5   : > { %v1135_v60 = vpop.permute.xlu1 %1134  ;;  %v1133_v61 = vpop.permute.xlu0 %1132  ;;  %2513 = vmatpush.msra.mxu2 %v1906_v24  ;;  %2514 = vmatpush.msra.mxu3 %v1906_v24 }
 0x1f6   : > { %1220 = vst.msk [vmem:[#allocation2 + $0x58] sm:$0xff] %vm1208_vm5, %v1135_v60  ;;  %v1155_v28 = vpop.permute.xlu2 %1154  ;;  %v2471_v60 = vld [vmem:[%s2650_s16 + $0x172] sm:$0xff]  ;;  %2010 = vmatpush.msra.mxu0 %v1906_v24  ;;  %v2457_v24 = vld [vmem:[%s2650_s16 + $0xca] sm:$0xff] }
 0x1f7   : > { %1219 = vst.msk [vmem:[#allocation2 + $0x50] sm:$0xff] %vm1208_vm5, %v1133_v61  ;;  %v1905_v61 = vld [vmem:[%s3977_s1 + $0x40] sm:$0xff] }
 0x1f8   : > { %1230 = vst.msk [vmem:[#allocation2 + $0xa8] sm:$0xff] %vm1208_vm5, %v1155_v28  ;;  %2515 = vmatpush.msra.mxu1 %v1905_v61  ;;  %2516 = vmatpush.msra.mxu2 %v1905_v61 }
 0x1f9   : > { %2517 = vmatpush.msra.mxu3 %v1905_v61  ;;  %2011 = vmatpush.msra.mxu0 %v1905_v61 }
 0x1fb   : > { %1501 = vrot.lane.b32.xlu1 %v2412_v26, %s2607_s23  ;;  %1829 = vrot.lane.b32.xlu0 %v2476_v34, %s2610_s25  ;;  %v1904_v34 = vld [vmem:[%s3977_s1 + $0x38] sm:$0xff] }
 0x1fc   : > { %1517 = vrot.lane.b32.xlu2 %v2420_v59, %s2607_s23  ;;  %v2423_v59 = vld [vmem:[%s2650_s16 + $0xb1] sm:$0xff]  ;;  %2518 = vmatpush.msra.mxu1 %v1904_v34 }
 0x1fd   : > { %v1141_v40 = vpop.permute.xlu1 %1140  ;;  %v1139_v51 = vpop.permute.xlu0 %1138  ;;  %2519 = vmatpush.msra.mxu2 %v1904_v34  ;;  %2520 = vmatpush.msra.mxu3 %v1904_v34 }
 0x1fe   : > { %1223 = vst.msk [vmem:[#allocation2 + $0x70] sm:$0xff] %vm1208_vm5, %v1141_v40  ;;  %v1161_v53 = vpop.permute.xlu2 %1160  ;;  %v2415_v40 = vld [vmem:[%s2650_s16 + $0x51] sm:$0xff]  ;;  %2012 = vmatpush.msra.mxu0 %v1904_v34  ;;  %v2442_v34 = vld [vmem:[%s2650_s16 + $0x199] sm:$0xff] }
 0x1ff   : > { %1222 = vst.msk [vmem:[#allocation2 + $0x68] sm:$0xff] %vm1208_vm5, %v1139_v51  ;;  %v1903_v51 = vld [vmem:[%s3977_s1 + $0x30] sm:$0xff] }
 0x200   : > { %1233 = vst.msk [vmem:[#allocation2 + $0xc0] sm:$0xff] %vm1208_vm5, %v1161_v53  ;;  %v2400_v53 = vld [vmem:[%s2650_s16 + $0x120] sm:$0xff]  ;;  %2521 = vmatpush.msra.mxu1 %v1903_v51  ;;  %2522 = vmatpush.msra.mxu2 %v1903_v51 }
 0x201   : > { %2523 = vmatpush.msra.mxu3 %v1903_v51  ;;  %2013 = vmatpush.msra.mxu0 %v1903_v51 }
 0x203   : > { %1694 = vrot.lane.b32.xlu1 %v2444_v50, %s2608_s24  ;;  %1358 = vrot.lane.b32.xlu0 %v3058_v38, %s2606_s22  ;;  %v1902_v50 = vld [vmem:[%s3977_s1 + $0x28] sm:$0xff] }
 0x204   : > { %1710 = vrot.lane.b32.xlu2 %v2452_v37, %s2608_s24  ;;  %v1901_v37 = vld [vmem:[%s3977_s1 + $0x20] sm:$0xff]  ;;  %2524 = vmatpush.msra.mxu1 %v1902_v50 }
 0x205   : > { %v1147_v44 = vpop.permute.xlu1 %1146  ;;  %v1145_v57 = vpop.permute.xlu0 %1144  ;;  %2525 = vmatpush.msra.mxu2 %v1902_v50  ;;  %2526 = vmatpush.msra.mxu3 %v1902_v50 }
 0x206   : > { %1226 = vst.msk [vmem:[#allocation2 + $0x88] sm:$0xff] %vm1208_vm5, %v1147_v44  ;;  %v1167_v47 = vpop.permute.xlu2 %1166  ;;  %2527 = vmatpush.msra.mxu1 %v1901_v37  ;;  %2014 = vmatpush.msra.mxu0 %v1902_v50 }
 0x207   : > { %1225 = vst.msk [vmem:[#allocation2 + $0x80] sm:$0xff] %vm1208_vm5, %v1145_v57  ;;  %2528 = vmatpush.msra.mxu2 %v1901_v37  ;;  %2529 = vmatpush.msra.mxu3 %v1901_v37 }
 0x208   : > { %1236 = vst.msk [vmem:[#allocation2 + $0xd8] sm:$0xff] %vm1208_vm5, %v1167_v47  ;;  %2015 = vmatpush.msra.mxu0 %v1901_v37  ;;  %v2426_v37 = vld [vmem:[%s2650_s16 + $0xd9] sm:$0xff] }
 0x20b   : > { %1551 = vrot.lane.b32.xlu1 %v2437_v62, %s2607_s23  ;;  %1535 = vrot.lane.b32.xlu0 %v2429_v35, %s2607_s23  ;;  %v1900_v62 = vld [vmem:[%s3977_s1 + $0x18] sm:$0xff] }
 0x20c   : > { %1728 = vrot.lane.b32.xlu2 %v2461_v54, %s2608_s24  ;;  %v2447_v35 = vld [vmem:[%s2650_s16 + $0x52] sm:$0xff]  ;;  %2530 = vmatpush.msra.mxu1 %v1900_v62 }
 0x20d   : > { %v1153_v38 = vpop.permute.xlu1 %1152  ;;  %v1151_v31 = vpop.permute.xlu0 %1150  ;;  %v2455_v54 = vld [vmem:[%s2650_s16 + $0xb2] sm:$0xff]  ;;  %2531 = vmatpush.msra.mxu2 %v1900_v62  ;;  %2532 = vmatpush.msra.mxu3 %v1900_v62 }
 0x20e   : > { %1229 = vst.msk [vmem:[#allocation2 + $0xa0] sm:$0xff] %vm1208_vm5, %v1153_v38  ;;  %v1173_v42 = vpop.permute.xlu2 %1172  ;;  %v1899_v38 = vld [vmem:[%s3977_s1 + $0x10] sm:$0xff]  ;;  %2016 = vmatpush.msra.mxu0 %v1900_v62 }
 0x20f   : > { %1228 = vst.msk [vmem:[#allocation2 + $0x98] sm:$0xff] %vm1208_vm5, %v1151_v31  ;;  %v1898_v31 = vld [vmem:[%s3977_s1 + $0x8] sm:$0xff]  ;;  %2533 = vmatpush.msra.mxu1 %v1899_v38  ;;  %2534 = vmatpush.msra.mxu2 %v1899_v38 }
 0x210   : > { %1239 = vst.msk [vmem:[#allocation2 + $0xf0] sm:$0xff] %vm1208_vm5, %v1173_v42  ;;  %2535 = vmatpush.msra.mxu3 %v1899_v38  ;;  %2017 = vmatpush.msra.mxu0 %v1899_v38  ;;  %v2450_v38 = vld [vmem:[%s2650_s16 + $0x7a] sm:$0xff] }
 0x211   : > { %2536 = vmatpush.msra.mxu1 %v1898_v31  ;;  %2537 = vmatpush.msra.mxu2 %v1898_v31 }
 0x212   : > { %2538 = vmatpush.msra.mxu3 %v1898_v31  ;;  %2018 = vmatpush.msra.mxu0 %v1898_v31  ;;  %v2411_v31 = vld [vmem:[%s2650_s16 + $0x1a0] sm:$0xff] }
 0x213   : > { %1503 = vrot.lane.b32.xlu1 %v2413_v46, %s2607_s23  ;;  %1744 = vrot.lane.b32.xlu0 %v2469_v30, %s2608_s24  ;;  %v1897_v30 = vld [vmem:[%s3977_s1] sm:$0xff] }
 0x214   : > { %1519 = vrot.lane.b32.xlu2 %v2421_v0, %s2607_s23  ;;  %v2432_v0 = vld [vmem:[%s2650_s16 + $0x121] sm:$0xff]  ;;  %2539 = vmatpush.msra.mxu1 %v1897_v30 }
 0x215   : > { %v1159_v2 = vpop.permute.xlu1 %1158  ;;  %v1157_v32 = vpop.permute.xlu0 %1156  ;;  %2540 = vmatpush.msra.mxu2 %v1897_v30  ;;  %2541 = vmatpush.msra.mxu3 %v1897_v30 }
 0x216   : > { %1232 = vst.msk [vmem:[#allocation2 + $0xb8] sm:$0xff] %vm1208_vm5, %v1159_v2  ;;  %v1311_v5 = vpop.permute.xlu2 %1310  ;;  %v2464_v2 = vld [vmem:[%s2650_s16 + $0x122] sm:$0xff]  ;;  %2019 = vmatpush.msra.mxu0 %v1897_v30 }
 0x217   : > { %1231 = vst.msk [vmem:[#allocation2 + $0xb0] sm:$0xff] %vm1208_vm5, %v1157_v32 }
 0x218   : > { %1406 = vst.msk [vmem:[#allocation2 + $0x8] sm:$0xff] %vm1404_vm7, %v1311_v5 }
 0x21b   : > { %1360 = vrot.lane.b32.xlu1 %v3126_v29, %s2606_s22  ;;  %1344 = vrot.lane.b32.xlu0 %v2398_v6, %s2606_s22 }
 0x21c   : > { %1696 = vrot.lane.b32.xlu2 %v2445_v7, %s2608_s24  ;;  %v2416_v7 = vld [vmem:[%s2650_s16 + $0x61] sm:$0xff] }
 0x21d   : > { %v1165_v8 = vpop.permute.xlu1 %1164  ;;  %v1163_v9 = vpop.permute.xlu0 %1162 }
 0x21e   : > { %1235 = vst.msk [vmem:[#allocation2 + $0xd0] sm:$0xff] %vm1208_vm5, %v1165_v8  ;;  %v1317_v10 = vpop.permute.xlu2 %1316 }
 0x21f   : > { %1234 = vst.msk [vmem:[#allocation2 + $0xc8] sm:$0xff] %vm1208_vm5, %v1163_v9 }
 0x220   : > { %1409 = vst.msk [vmem:[#allocation2 + $0x20] sm:$0xff] %vm1404_vm7, %v1317_v10 }
 0x223   : > { %1537 = vrot.lane.b32.xlu1 %v2430_v11, %s2607_s23  ;;  %1712 = vrot.lane.b32.xlu0 %v2453_v12, %s2608_s24  ;;  %v2409_v11 = vld [vmem:[%s2650_s16 + $0x188] sm:$0xff] }
 0x224   : > { %1553 = vrot.lane.b32.xlu2 %v2438_v48, %s2607_s23  ;;  %v2401_v12 = vld [vmem:[%s2650_s16 + $0x128] sm:$0xff] }
 0x225   : > { %v1171_v29 = vpop.permute.xlu1 %1170  ;;  %v1169_v49 = vpop.permute.xlu0 %1168  ;;  %v2448_v48 = vld [vmem:[%s2650_s16 + $0x62] sm:$0xff] }
 0x226   : > { %1238 = vst.msk [vmem:[#allocation2 + $0xe8] sm:$0xff] %vm1208_vm5, %v1171_v29  ;;  %v1323_v13 = vpop.permute.xlu2 %1322 }
 0x227   : > { %1237 = vst.msk [vmem:[#allocation2 + $0xe0] sm:$0xff] %vm1208_vm5, %v1169_v49 }
 0x228   : > { %1412 = vst.msk [vmem:[#allocation2 + $0x38] sm:$0xff] %vm1404_vm7, %v1323_v13  ;;  %v2433_v13 = vld [vmem:[%s2650_s16 + $0x129] sm:$0xff] }
 0x22b   : > { %1746 = vrot.lane.b32.xlu1 %v2470_v14, %s2608_s24  ;;  %1730 = vrot.lane.b32.xlu0 %v2462_v55, %s2608_s24  ;;  %v2456_v14 = vld [vmem:[%s2650_s16 + $0xc2] sm:$0xff] }
 0x22c   : > { %1505 = vrot.lane.b32.xlu2 %v2414_v56, %s2607_s23 }
 0x22d   : > { %v1309_v15 = vpop.permute.xlu1 %1308  ;;  %v1175_v16 = vpop.permute.xlu0 %1174 }
 0x22e   : > { %1405 = vst.msk [vmem:[#allocation2] sm:$0xff] %vm1404_vm7, %v1309_v15  ;;  %v1329_v4 = vpop.permute.xlu2 %1328 }
 0x22f   : > { %1240 = vst.msk [vmem:[#allocation2 + $0xf8] sm:$0xff] %vm1208_vm5, %v1175_v16 }
 0x230   : > { %1415 = vst.msk [vmem:[#allocation2 + $0x50] sm:$0xff] %vm1404_vm7, %v1329_v4 }
 0x233   : > { %1346 = vrot.lane.b32.xlu1 %v2399_v33, %s2606_s22  ;;  %1521 = vrot.lane.b32.xlu0 %v2422_v17, %s2607_s23  ;;  %v2417_v17 = vld [vmem:[%s2650_s16 + $0x69] sm:$0xff] }
 0x234   : > { %1362 = vrot.lane.b32.xlu2 %v2407_v18, %s2606_s22 }
 0x235   : > { %v1315_v63 = vpop.permute.xlu1 %1314  ;;  %v1313_v1 = vpop.permute.xlu0 %1312 }
 0x236   : > { %1408 = vst.msk [vmem:[#allocation2 + $0x18] sm:$0xff] %vm1404_vm7, %v1315_v63  ;;  %v1335_v19 = vpop.permute.xlu2 %1334 }
 0x237   : > { %1407 = vst.msk [vmem:[#allocation2 + $0x10] sm:$0xff] %vm1404_vm7, %v1313_v1 }
 0x238   : > { %1418 = vst.msk [vmem:[#allocation2 + $0x68] sm:$0xff] %vm1404_vm7, %v1335_v19 }
 0x23b   : > { %1714 = vrot.lane.b32.xlu1 %v2454_v20, %s2608_s24  ;;  %1698 = vrot.lane.b32.xlu0 %v2446_v58, %s2608_s24  ;;  %v2402_v20 = vld [vmem:[%s2650_s16 + $0x138] sm:$0xff] }
 0x23c   : > { %1539 = vrot.lane.b32.xlu2 %v2431_v36, %s2607_s23  ;;  %v2410_v58 = vld [vmem:[%s2650_s16 + $0x198] sm:$0xff] }
 0x23d   : > { %v1321_v21 = vpop.permute.xlu1 %1320  ;;  %v1319_v22 = vpop.permute.xlu0 %1318 }
 0x23e   : > { %1411 = vst.msk [vmem:[#allocation2 + $0x30] sm:$0xff] %vm1404_vm7, %v1321_v21  ;;  %v1341_v23 = vpop.permute.xlu2 %1340 }
 0x23f   : > { %1410 = vst.msk [vmem:[#allocation2 + $0x28] sm:$0xff] %vm1404_vm7, %v1319_v22 }
 0x240   : > { %1421 = vst.msk [vmem:[#allocation2 + $0x80] sm:$0xff] %vm1404_vm7, %v1341_v23 }
 0x243   : > { %1732 = vrot.lane.b32.xlu1 %v2463_v45, %s2608_s24  ;;  %1555 = vrot.lane.b32.xlu0 %v2439_v25, %s2607_s23  ;;  %v2449_v45 = vld [vmem:[%s2650_s16 + $0x6a] sm:$0xff]  ;;  %v2434_v25 = vld [vmem:[%s2650_s16 + $0x139] sm:$0xff] }
 0x244   : > { %1748 = vrot.lane.b32.xlu2 %v2471_v60, %s2608_s24 }
 0x245   : > { %v1327_v28 = vpop.permute.xlu1 %1326  ;;  %v1325_v26 = vpop.permute.xlu0 %1324 }
 0x246   : > { %1414 = vst.msk [vmem:[#allocation2 + $0x48] sm:$0xff] %vm1404_vm7, %v1327_v28  ;;  %v1534_v27 = vpop.permute.xlu2 %1533 }
 0x247   : > { %1413 = vst.msk [vmem:[#allocation2 + $0x40] sm:$0xff] %vm1404_vm7, %v1325_v26 }
 0x248   : > { %1614 = vst.msk [vmem:[#allocation2 + $0x80] sm:$0xff] %vm1597_vm8, %v1534_v27  ;;  %v2466_v27 = vld [vmem:[%s2650_s16 + $0x13a] sm:$0xff] }
 0x24b   : > { %1523 = vrot.lane.b32.xlu1 %v2423_v59, %s2607_s23  ;;  %1507 = vrot.lane.b32.xlu0 %v2415_v40, %s2607_s23  ;;  %v2474_v40 = vld [vmem:[%s2650_s16 + $0x19a] sm:$0xff] }
 0x24c   : > { %1348 = vrot.lane.b32.xlu2 %v2400_v53, %s2606_s22 }
 0x24d   : > { %v1333_v44 = vpop.permute.xlu1 %1332  ;;  %v1331_v57 = vpop.permute.xlu0 %1330 }
 0x24e   : > { %1417 = vst.msk [vmem:[#allocation2 + $0x60] sm:$0xff] %vm1404_vm7, %v1333_v44  ;;  %v1743_v47 = vpop.permute.xlu2 %1742  ;;  %v2418_v44 = vld [vmem:[%s2650_s16 + $0x79] sm:$0xff] }
 0x24f   : > { %1416 = vst.msk [vmem:[#allocation2 + $0x58] sm:$0xff] %vm1404_vm7, %v1331_v57  ;;  %v2403_v57 = vld [vmem:[%s2650_s16 + $0x140] sm:$0xff] }
 0x253   : > { %1700 = vrot.lane.b32.xlu1 %v2447_v35, %s2608_s24  ;;  %1364 = vrot.lane.b32.xlu0 %v3226_v52, %s2606_s22 }
 0x254   : > { %1716 = vrot.lane.b32.xlu2 %v2455_v54, %s2608_s24 }
 0x255   : > { %v1339_v42 = vpop.permute.xlu1 %1338  ;;  %v1337_v46 = vpop.permute.xlu0 %1336 }
 0x256   : > { %1420 = vst.msk [vmem:[#allocation2 + $0x78] sm:$0xff] %vm1404_vm7, %v1339_v42  ;;  %v1518_v52 = vpop.permute.xlu2 %1517  ;;  %v2458_v42 = vld [vmem:[%s2650_s16 + $0xda] sm:$0xff] }
 0x257   : > { %1419 = vst.msk [vmem:[#allocation2 + $0x70] sm:$0xff] %vm1404_vm7, %v1337_v46 }
 0x258   : > { %1606 = vst.msk [vmem:[#allocation2 + $0x40] sm:$0xff] %vm1597_vm8, %v1518_v52 }
 0x25b   : > { %1557 = vrot.lane.b32.xlu1 %v3331_v39, %s2607_s23  ;;  %1541 = vrot.lane.b32.xlu0 %v2432_v0, %s2607_s23  ;;  %v2424_v39 = vld [vmem:[%s2650_s16 + $0xc1] sm:$0xff] }
 0x25c   : > { %1734 = vrot.lane.b32.xlu2 %v2464_v2, %s2608_s24 }
 0x25d   : > { %v1357_v32 = vpop.permute.xlu1 %1356  ;;  %v1343_v5 = vpop.permute.xlu0 %1342 }
 0x25e   : > { %1429 = vst.msk [vmem:[#allocation2 + $0xc0] sm:$0xff] %vm1404_vm7, %v1357_v32  ;;  %v1711_v6 = vpop.permute.xlu2 %1710  ;;  %v2443_v32 = vld [vmem:[%s2650_s16 + $0x1a1] sm:$0xff] }
 0x25f   : > { %1422 = vst.msk [vmem:[#allocation2 + $0x88] sm:$0xff] %vm1404_vm7, %v1343_v5  ;;  %v2435_v5 = vld [vmem:[%s2650_s16 + $0x141] sm:$0xff] }
 0x260   : > { %1799 = vst.msk [vmem:[#allocation2 + $0x40] sm:$0xff] %vm1790_vm9, %v1711_v6  ;;  %v2467_v6 = vld [vmem:[%s2650_s16 + $0x142] sm:$0xff] }
 0x263   : > { %1509 = vrot.lane.b32.xlu1 %v2416_v7, %s2607_s23  ;;  %1750 = vrot.lane.b32.xlu0 %v3425_v41, %s2608_s24 }
 0x264   : > { %1525 = vrot.lane.b32.xlu2 %v2424_v39, %s2607_s23 }
 0x265   : > { %v1727_v8 = vpop.permute.xlu1 %1726  ;;  %v1550_v9 = vpop.permute.xlu0 %1549 }
 0x266   : > { %1807 = vst.msk [vmem:[#allocation2 + $0x80] sm:$0xff] %vm1790_vm9, %v1727_v8  ;;  %v1729_v10 = vpop.permute.xlu2 %1728 }
 0x267   : > { %1622 = vst.msk [vmem:[#allocation2 + $0xc0] sm:$0xff] %vm1597_vm8, %v1550_v9  ;;  %v2419_v9 = vld [vmem:[%s2650_s16 + $0x81] sm:$0xff] }
 0x268   : > { %1815 = vst.msk [vmem:[#allocation2 + $0xc0] sm:$0xff] %vm1790_vm9, %v1743_v47 }
 0x26b   : > { %1366 = vrot.lane.b32.xlu1 %v2409_v11, %s2606_s22  ;;  %1350 = vrot.lane.b32.xlu0 %v2401_v12, %s2606_s22  ;;  %v2427_v11 = vld [vmem:[%s2650_s16 + $0xe1] sm:$0xff] }
 0x26c   : > { %1702 = vrot.lane.b32.xlu2 %v2448_v48, %s2608_s24 }
 0x26d   : > { %v1502_v41 = vpop.permute.xlu1 %1501  ;;  %v3670_v29 = vpop.permute.xlu0 %1829 }
 0x26e   : > { %1598 = vst.msk [vmem:[#allocation2] sm:$0xff] %vm1597_vm8, %v1502_v41  ;;  %v1520_v49 = vpop.permute.xlu2 %1519 }
 0x26f   : > { %1841 = vst.msk [vmem:[#allocation2 + $0x40] sm:$0xff] %vm1832_vm10, %v3670_v29 }
 0x270   : > { %1849 = vst.msk [vmem:[#allocation2 + $0x80] sm:$0xff] %vm1832_vm10, %v3670_v29 }
 0x271   : > { %1857 = vst.msk [vmem:[#allocation2 + $0xc0] sm:$0xff] %vm1832_vm10, %v3670_v29 }
 0x272   : > { %1607 = vst.msk [vmem:[#allocation2 + $0x48] sm:$0xff] %vm1597_vm8, %v1520_v49 }
 0x273   : > { %1543 = vrot.lane.b32.xlu1 %v2433_v13, %s2607_s23  ;;  %1718 = vrot.lane.b32.xlu0 %v2456_v14, %s2608_s24  ;;  %v2459_v14 = vld [vmem:[%s2650_s16 + $0xe2] sm:$0xff] }
 0x274   : > { %1559 = vrot.lane.b32.xlu2 %v3328_v43, %s2607_s23  ;;  %v2465_v43 = vld [vmem:[%s2650_s16 + $0x12a] sm:$0xff] }
 0x275   : > { %v1695_v55 = vpop.permute.xlu1 %1694  ;;  %v1359_v56 = vpop.permute.xlu0 %1358 }
 0x276   : > { %1791 = vst.msk [vmem:[#allocation2] sm:$0xff] %vm1790_vm9, %v1695_v55  ;;  %v1873_v15 = vld [vmem:[#allocation2 + $0x40] sm:$0xff]  ;;  %v1697_v16 = vpop.permute.xlu2 %1696 }
 0x277   : > { %1833 = vst.msk [vmem:[#allocation2] sm:$0xff] %vm1832_vm10, %v3670_v29  ;;  %2485 = vmatmul.msk.f32.vlgmr.msra.gmra.mxu1 %vm1907_vm11, %v1873_v15  ;;  %v1881_v4 = vld [vmem:[#allocation2 + $0x80] sm:$0xff] }
 0x278   : > { %1430 = vst.msk [vmem:[#allocation2 + $0xc8] sm:$0xff] %vm1404_vm7, %v1359_v56  ;;  %2493 = vmatmul.msk.f32.vlgmr.msra.gmra.mxu2 %vm1907_vm11, %v1881_v4  ;;  %v1889_v33 = vld [vmem:[#allocation2 + $0xc0] sm:$0xff] }
 0x279   : > { %2501 = vmatmul.msk.f32.vlgmr.msra.gmra.mxu3 %vm1907_vm11, %v1889_v33  ;;  %v2451_v55 = vld [vmem:[%s2650_s16 + $0x82] sm:$0xff] }
 0x27b   : > { %1752 = vrot.lane.b32.xlu1 %v3437_v3, %s2608_s24  ;;  %1736 = vrot.lane.b32.xlu0 %v2465_v43, %s2608_s24  ;;  %v2425_v3 = vld [vmem:[%s2650_s16 + $0xc9] sm:$0xff] }
 0x27c   : > { %1511 = vrot.lane.b32.xlu2 %v2417_v17, %s2607_s23 }
 0x27d   : > { %v1552_v18 = vpop.permute.xlu1 %1551  ;;  %v1536_v63 = vpop.permute.xlu0 %1535 }
 0x27e   : > { %1623 = vst.msk [vmem:[#allocation2 + $0xc8] sm:$0xff] %vm1597_vm8, %v1552_v18  ;;  %v1865_v1 = vld [vmem:[#allocation2] sm:$0xff]  ;;  %v1554_v19 = vpop.permute.xlu2 %1553 }
 0x27f   : > { %1615 = vst.msk [vmem:[#allocation2 + $0x88] sm:$0xff] %vm1597_vm8, %v1536_v63  ;;  %2477 = vmatmul.msk.f32.vlgmr.msra.gmra.mxu0 %vm1907_vm11, %v1865_v1 }
 0x280   : > { %1808 = vst.msk [vmem:[#allocation2 + $0x88] sm:$0xff] %vm1790_vm9, %v1729_v10  ;;  %v2475_v10 = vld [vmem:[%s2650_s16 + $0x1a2] sm:$0xff]  ;;  %s2511_s16 = sshll.u32 %s4074_s9, 8 }
 0x281   : > { %1850 = vst.msk [vmem:[#allocation2 + $0x88] sm:$0xff] %vm1832_vm10, %v3670_v29 }
 0x283   : > { %1352 = vrot.lane.b32.xlu1 %v2402_v20, %s2606_s22  ;;  %1527 = vrot.lane.b32.xlu0 %v2425_v3, %s2607_s23 }
 0x284   : > { %1368 = vrot.lane.b32.xlu2 %v2410_v58, %s2606_s22 }
 0x285   : > { %v1504_v36 = vpop.permute.xlu1 %1503  ;;  %v1745_v21 = vpop.permute.xlu0 %1744 }
 0x286   : > { %1599 = vst.msk [vmem:[#allocation2 + $0x8] sm:$0xff] %vm1597_vm8, %v1504_v36  ;;  %v1506_v22 = vpop.permute.xlu2 %1505 }
 0x287   : > { %1816 = vst.msk [vmem:[#allocation2 + $0xc8] sm:$0xff] %vm1790_vm9, %v1745_v21 }
 0x288   : > { %1858 = vst.msk [vmem:[#allocation2 + $0xc8] sm:$0xff] %vm1832_vm10, %v3670_v29  ;;  %v1882_v23 = vld [vmem:[#allocation2 + $0x88] sm:$0xff] }
 0x289   : > { %1792 = vst.msk [vmem:[#allocation2 + $0x8] sm:$0xff] %vm1790_vm9, %v1697_v16  ;;  %2494 = vmatmul.msk.f32.gmra.mxu2 %vm1907_vm11, %v1882_v23 }
 0x28a   : > { %1834 = vst.msk [vmem:[#allocation2 + $0x8] sm:$0xff] %vm1832_vm10, %v3670_v29 }
 0x28b   : > { %1720 = vrot.lane.b32.xlu1 %v2457_v24, %s2608_s24  ;;  %1704 = vrot.lane.b32.xlu0 %v2449_v45, %s2608_s24  ;;  %1600 = vst.msk [vmem:[#allocation2 + $0x10] sm:$0xff] %vm1597_vm8, %v1506_v22 }
 0x28c   : > { %1545 = vrot.lane.b32.xlu2 %v2434_v25, %s2607_s23 }
 0x28d   : > { %v1361_v60 = vpop.permute.xlu1 %1360  ;;  %v1345_v61 = vpop.permute.xlu0 %1344 }
 0x28e   : > { %1431 = vst.msk [vmem:[#allocation2 + $0xd0] sm:$0xff] %vm1404_vm7, %v1361_v60  ;;  %v1363_v28 = vpop.permute.xlu2 %1362 }
 0x28f   : > { %1423 = vst.msk [vmem:[#allocation2 + $0x90] sm:$0xff] %vm1404_vm7, %v1345_v61  ;;  %v1890_v26 = vld [vmem:[#allocation2 + $0xc8] sm:$0xff] }
 0x290   : > { %1624 = vst.msk [vmem:[#allocation2 + $0xd0] sm:$0xff] %vm1597_vm8, %v1554_v19  ;;  %2502 = vmatmul.msk.f32.gmra.mxu3 %vm1907_vm11, %v1890_v26 }
 0x291   : > { %v1866_v59 = vld [vmem:[#allocation2 + $0x8] sm:$0xff]  ;;  %1432 = vst.msk [vmem:[#allocation2 + $0xd8] sm:$0xff] %vm1404_vm7, %v1363_v28 }
 0x292   : > { %2478 = vmatmul.msk.f32.gmra.mxu0 %vm1907_vm11, %v1866_v59 }
 0x293   : > { %1738 = vrot.lane.b32.xlu1 %v2466_v27, %s2608_s24  ;;  %1561 = vrot.lane.b32.xlu0 %v2442_v34, %s2607_s23 }
 0x294   : > { %1754 = vrot.lane.b32.xlu2 %v2474_v40, %s2608_s24 }
 0x295   : > { %v1538_v51 = vpop.permute.xlu1 %1537  ;;  %v1713_v53 = vpop.permute.xlu0 %1712 }
 0x296   : > { %1616 = vst.msk [vmem:[#allocation2 + $0x90] sm:$0xff] %vm1597_vm8, %v1538_v51  ;;  %v1540_v50 = vpop.permute.xlu2 %1539 }
 0x297   : > { %1800 = vst.msk [vmem:[#allocation2 + $0x48] sm:$0xff] %vm1790_vm9, %v1713_v53 }
 0x298   : > { %1842 = vst.msk [vmem:[#allocation2 + $0x48] sm:$0xff] %vm1832_vm10, %v3670_v29 }
 0x29b   : > { %1529 = vrot.lane.b32.xlu1 %v2426_v37, %s2607_s23  ;;  %1513 = vrot.lane.b32.xlu0 %v2418_v44, %s2607_s23 }
 0x29c   : > { %1354 = vrot.lane.b32.xlu2 %v2403_v57, %s2606_s22 }
 0x29d   : > { %v1747_v47 = vpop.permute.xlu1 %1746  ;;  %v1731_v62 = vpop.permute.xlu0 %1730 }
 0x29e   : > { %1817 = vst.msk [vmem:[#allocation2 + $0xd0] sm:$0xff] %vm1790_vm9, %v1747_v47  ;;  %v1749_v35 = vpop.permute.xlu2 %1748 }
 0x29f   : > { %1859 = vst.msk [vmem:[#allocation2 + $0xd0] sm:$0xff] %vm1832_vm10, %v3670_v29  ;;  %v1874_v54 = vld [vmem:[#allocation2 + $0x48] sm:$0xff] }
 0x2a0   : > { %1809 = vst.msk [vmem:[#allocation2 + $0x90] sm:$0xff] %vm1790_vm9, %v1731_v62  ;;  %2486 = vmatmul.msk.f32.gmra.mxu1 %vm1907_vm11, %v1874_v54 }
 0x2a1   : > { %1851 = vst.msk [vmem:[#allocation2 + $0x90] sm:$0xff] %vm1832_vm10, %v3670_v29 }
 0x2a3   : > { %1706 = vrot.lane.b32.xlu1 %v2450_v38, %s2608_s24  ;;  %1370 = vrot.lane.b32.xlu0 %v2411_v31, %s2606_s22 }
 0x2a4   : > { %1722 = vrot.lane.b32.xlu2 %v2458_v42, %s2608_s24 }
 0x2a5   : > { %v1347_v46 = vpop.permute.xlu1 %1346  ;;  %v1522_v30 = vpop.permute.xlu0 %1521 }
 0x2a6   : > { %1424 = vst.msk [vmem:[#allocation2 + $0x98] sm:$0xff] %vm1404_vm7, %v1347_v46  ;;  %v1891_v52 = vld [vmem:[#allocation2 + $0xd0] sm:$0xff]  ;;  %v1349_v0 = vpop.permute.xlu2 %1348 }
 0x2a7   : > { %1608 = vst.msk [vmem:[#allocation2 + $0x50] sm:$0xff] %vm1597_vm8, %v1522_v30  ;;  %2503 = vmatmul.msk.f32.gmra.mxu3 %vm1907_vm11, %v1891_v52 }
 0x2a8   : > { %1617 = vst.msk [vmem:[#allocation2 + $0x98] sm:$0xff] %vm1597_vm8, %v1540_v50  ;;  %v1883_v2 = vld [vmem:[#allocation2 + $0x90] sm:$0xff] }
 0x2a9   : > { %2495 = vmatmul.msk.f32.gmra.mxu2 %vm1907_vm11, %v1883_v2  ;;  %1425 = vst.msk [vmem:[#allocation2 + $0xa0] sm:$0xff] %vm1404_vm7, %v1349_v0 }
 0x2ab   : > { %1563 = vrot.lane.b32.xlu1 %v2443_v32, %s2607_s23  ;;  %1547 = vrot.lane.b32.xlu0 %v2435_v5, %s2607_s23 }
 0x2ac   : > { %1740 = vrot.lane.b32.xlu2 %v2467_v6, %s2608_s24 }
 0x2ad   : > { %v1715_v7 = vpop.permute.xlu1 %1714  ;;  %v1699_v39 = vpop.permute.xlu0 %1698 }
 0x2ae   : > { %1801 = vst.msk [vmem:[#allocation2 + $0x50] sm:$0xff] %vm1790_vm9, %v1715_v7  ;;  %v1717_v8 = vpop.permute.xlu2 %1716 }
 0x2af   : > { %1843 = vst.msk [vmem:[#allocation2 + $0x50] sm:$0xff] %vm1832_vm10, %v3670_v29 }
 0x2b0   : > { %1793 = vst.msk [vmem:[#allocation2 + $0x10] sm:$0xff] %vm1790_vm9, %v1699_v39 }
 0x2b1   : > { %1835 = vst.msk [vmem:[#allocation2 + $0x10] sm:$0xff] %vm1832_vm10, %v3670_v29 }
 0x2b3   : > { %1515 = vrot.lane.b32.xlu1 %v2419_v9, %s2607_s23  ;;  %1756 = vrot.lane.b32.xlu0 %v2475_v10, %s2608_s24 }
 0x2b4   : > { %1531 = vrot.lane.b32.xlu2 %v2427_v11, %s2607_s23 }
 0x2b5   : > { %v1733_v12 = vpop.permute.xlu1 %1732  ;;  %v1556_v48 = vpop.permute.xlu0 %1555 }
 0x2b6   : > { %1810 = vst.msk [vmem:[#allocation2 + $0x98] sm:$0xff] %vm1790_vm9, %v1733_v12  ;;  %v1875_v41 = vld [vmem:[#allocation2 + $0x50] sm:$0xff]  ;;  %v1735_v49 = vpop.permute.xlu2 %1734 }
 0x2b7   : > { %1852 = vst.msk [vmem:[#allocation2 + $0x98] sm:$0xff] %vm1832_vm10, %v3670_v29  ;;  %2487 = vmatmul.msk.f32.gmra.mxu1 %vm1907_vm11, %v1875_v41 }
 0x2b8   : > { %1625 = vst.msk [vmem:[#allocation2 + $0xd8] sm:$0xff] %vm1597_vm8, %v1556_v48  ;;  %v1867_v13 = vld [vmem:[#allocation2 + $0x10] sm:$0xff] }
 0x2b9   : > { %1818 = vst.msk [vmem:[#allocation2 + $0xd8] sm:$0xff] %vm1790_vm9, %v1749_v35  ;;  %2479 = vmatmul.msk.f32.gmra.mxu0 %vm1907_vm11, %v1867_v13 }
 0x2ba   : > { %1860 = vst.msk [vmem:[#allocation2 + $0xd8] sm:$0xff] %vm1832_vm10, %v3670_v29 }
 0x2bb   : > { %1724 = vrot.lane.b32.xlu1 %v2459_v14, %s2608_s24  ;;  %1708 = vrot.lane.b32.xlu0 %v2451_v55, %s2608_s24  ;;  %s3847_s24 = scalar_lea.vmem %s3978_s2, %s2511_s16 }
 0x2bd   : > { %v1524_v56 = vpop.permute.xlu1 %1523  ;;  %v1508_v15 = vpop.permute.xlu0 %1507 }
 0x2be   : > { %1609 = vst.msk [vmem:[#allocation2 + $0x58] sm:$0xff] %vm1597_vm8, %v1524_v56  ;;  %v1884_v16 = vld [vmem:[#allocation2 + $0x98] sm:$0xff]  ;;  %v1526_v4 = vpop.permute.xlu2 %1525 }
 0x2bf   : > { %1601 = vst.msk [vmem:[#allocation2 + $0x18] sm:$0xff] %vm1597_vm8, %v1508_v15  ;;  %2496 = vmatmul.msk.f32.gmra.mxu2 %vm1907_vm11, %v1884_v16 }
 0x2c0   : > { %1802 = vst.msk [vmem:[#allocation2 + $0x58] sm:$0xff] %vm1790_vm9, %v1717_v8 }
 0x2c1   : > { %1844 = vst.msk [vmem:[#allocation2 + $0x58] sm:$0xff] %vm1832_vm10, %v3670_v29  ;;  %v1892_v33 = vld [vmem:[#allocation2 + $0xd8] sm:$0xff] }
 0x2c2   : > { %2504 = vmatmul.msk.f32.gmra.mxu3 %vm1907_vm11, %v1892_v33  ;;  %1610 = vst.msk [vmem:[#allocation2 + $0x60] sm:$0xff] %vm1597_vm8, %v1526_v4 }
 0x2c5   : > { %v1701_v43 = vpop.permute.xlu1 %1700  ;;  %v1365_v17 = vpop.permute.xlu0 %1364 }
 0x2c6   : > { %1794 = vst.msk [vmem:[#allocation2 + $0x18] sm:$0xff] %vm1790_vm9, %v1701_v43  ;;  %v1703_v18 = vpop.permute.xlu2 %1702 }
 0x2c7   : > { %1836 = vst.msk [vmem:[#allocation2 + $0x18] sm:$0xff] %vm1832_vm10, %v3670_v29 }
 0x2c8   : > { %1433 = vst.msk [vmem:[#allocation2 + $0xe0] sm:$0xff] %vm1404_vm7, %v1365_v17  ;;  %v1876_v63 = vld [vmem:[#allocation2 + $0x58] sm:$0xff] }
 0x2c9   : > { %2488 = vmatmul.msk.f32.gmra.mxu1 %vm1907_vm11, %v1876_v63 }
 0x2cd   : > { %v1558_v1 = vpop.permute.xlu1 %1557  ;;  %v1542_v19 = vpop.permute.xlu0 %1541 }
 0x2ce   : > { %1626 = vst.msk [vmem:[#allocation2 + $0xe0] sm:$0xff] %vm1597_vm8, %v1558_v1  ;;  %v1868_v20 = vld [vmem:[#allocation2 + $0x18] sm:$0xff]  ;;  %v1560_v3 = vpop.permute.xlu2 %1559 }
 0x2cf   : > { %1618 = vst.msk [vmem:[#allocation2 + $0xa0] sm:$0xff] %vm1597_vm8, %v1542_v19  ;;  %2480 = vmatmul.msk.f32.gmra.mxu0 %vm1907_vm11, %v1868_v20 }
 0x2d0   : > { %1811 = vst.msk [vmem:[#allocation2 + $0xa0] sm:$0xff] %vm1790_vm9, %v1735_v49 }
 0x2d1   : > { %1853 = vst.msk [vmem:[#allocation2 + $0xa0] sm:$0xff] %vm1832_vm10, %v3670_v29 }
 0x2d5   : > { %v1510_v58 = vpop.permute.xlu1 %1509  ;;  %v1751_v36 = vpop.permute.xlu0 %1750 }
 0x2d6   : > { %1602 = vst.msk [vmem:[#allocation2 + $0x20] sm:$0xff] %vm1597_vm8, %v1510_v58  ;;  %v1512_v21 = vpop.permute.xlu2 %1511 }
 0x2d7   : > { %1819 = vst.msk [vmem:[#allocation2 + $0xe0] sm:$0xff] %vm1790_vm9, %v1751_v36 }
 0x2d8   : > { %1861 = vst.msk [vmem:[#allocation2 + $0xe0] sm:$0xff] %vm1832_vm10, %v3670_v29  ;;  %v1885_v22 = vld [vmem:[#allocation2 + $0xa0] sm:$0xff] }
 0x2d9   : > { %1795 = vst.msk [vmem:[#allocation2 + $0x20] sm:$0xff] %vm1790_vm9, %v1703_v18  ;;  %2497 = vmatmul.msk.f32.gmra.mxu2 %vm1907_vm11, %v1885_v22 }
 0x2da   : > { %1837 = vst.msk [vmem:[#allocation2 + $0x20] sm:$0xff] %vm1832_vm10, %v3670_v29 }
 0x2db   : > { %1603 = vst.msk [vmem:[#allocation2 + $0x28] sm:$0xff] %vm1597_vm8, %v1512_v21 }
 0x2dd   : > { %v1367_v23 = vpop.permute.xlu1 %1366  ;;  %v1351_v24 = vpop.permute.xlu0 %1350 }
 0x2de   : > { %1434 = vst.msk [vmem:[#allocation2 + $0xe8] sm:$0xff] %vm1404_vm7, %v1367_v23  ;;  %v1369_v45 = vpop.permute.xlu2 %1368 }
 0x2df   : > { %1426 = vst.msk [vmem:[#allocation2 + $0xa8] sm:$0xff] %vm1404_vm7, %v1351_v24  ;;  %v1893_v25 = vld [vmem:[#allocation2 + $0xe0] sm:$0xff] }
 0x2e0   : > { %1627 = vst.msk [vmem:[#allocation2 + $0xe8] sm:$0xff] %vm1597_vm8, %v1560_v3  ;;  %2505 = vmatmul.msk.f32.gmra.mxu3 %vm1907_vm11, %v1893_v25 }
 0x2e1   : > { %v1869_v60 = vld [vmem:[#allocation2 + $0x20] sm:$0xff]  ;;  %1435 = vst.msk [vmem:[#allocation2 + $0xf0] sm:$0xff] %vm1404_vm7, %v1369_v45 }
 0x2e2   : > { %2481 = vmatmul.msk.f32.gmra.mxu0 %vm1907_vm11, %v1869_v60 }
 0x2e5   : > { %v1544_v61 = vpop.permute.xlu1 %1543  ;;  %v1719_v28 = vpop.permute.xlu0 %1718 }
 0x2e6   : > { %1619 = vst.msk [vmem:[#allocation2 + $0xa8] sm:$0xff] %vm1597_vm8, %v1544_v61  ;;  %v1546_v26 = vpop.permute.xlu2 %1545 }
 0x2e7   : > { %1803 = vst.msk [vmem:[#allocation2 + $0x60] sm:$0xff] %vm1790_vm9, %v1719_v28 }
 0x2e8   : > { %1845 = vst.msk [vmem:[#allocation2 + $0x60] sm:$0xff] %vm1832_vm10, %v3670_v29 }
 0x2ed   : > { %v1753_v27 = vpop.permute.xlu1 %1752  ;;  %v1737_v34 = vpop.permute.xlu0 %1736 }
 0x2ee   : > { %1820 = vst.msk [vmem:[#allocation2 + $0xe8] sm:$0xff] %vm1790_vm9, %v1753_v27  ;;  %v1755_v59 = vpop.permute.xlu2 %1754 }
 0x2ef   : > { %1862 = vst.msk [vmem:[#allocation2 + $0xe8] sm:$0xff] %vm1832_vm10, %v3670_v29  ;;  %v1877_v40 = vld [vmem:[#allocation2 + $0x60] sm:$0xff] }
 0x2f0   : > { %1812 = vst.msk [vmem:[#allocation2 + $0xa8] sm:$0xff] %vm1790_vm9, %v1737_v34  ;;  %2489 = vmatmul.msk.f32.gmra.mxu1 %vm1907_vm11, %v1877_v40 }
 0x2f1   : > { %1854 = vst.msk [vmem:[#allocation2 + $0xa8] sm:$0xff] %vm1832_vm10, %v3670_v29 }
 0x2f4   : > { %v2045_v51 = vpop.f32.mrf.mxu1 }
 0x2f5   : > { %2126 = vst.msk [vmem:[%s3847_s24 + $0x40] sm:$0xff] %vm240_vm0, %v2045_v51  ;;  %v1353_v53 = vpop.permute.xlu1 %1352  ;;  %v1528_v50 = vpop.permute.xlu0 %1527 }
 0x2f6   : > { %1427 = vst.msk [vmem:[#allocation2 + $0xb0] sm:$0xff] %vm1404_vm7, %v1353_v53  ;;  %v1894_v37 = vld [vmem:[#allocation2 + $0xe8] sm:$0xff]  ;;  %v1355_v44 = vpop.permute.xlu2 %1354 }
 0x2f7   : > { %1611 = vst.msk [vmem:[#allocation2 + $0x68] sm:$0xff] %vm1597_vm8, %v1528_v50  ;;  %2506 = vmatmul.msk.f32.gmra.mxu3 %vm1907_vm11, %v1894_v37 }
 0x2f8   : > { %1620 = vst.msk [vmem:[#allocation2 + $0xb0] sm:$0xff] %vm1597_vm8, %v1546_v26  ;;  %v1886_v57 = vld [vmem:[#allocation2 + $0xa8] sm:$0xff] }
 0x2f9   : > { %2498 = vmatmul.msk.f32.gmra.mxu2 %vm1907_vm11, %v1886_v57  ;;  %1428 = vst.msk [vmem:[#allocation2 + $0xb8] sm:$0xff] %vm1404_vm7, %v1355_v44 }
 0x2fb   : > { %v2069_v47 = vpop.f32.mrf.mxu2 }
 0x2fc   : > { %2134 = vst.msk [vmem:[%s3847_s24 + $0x80] sm:$0xff] %vm240_vm0, %v2069_v47  ;;  %v2093_v62 = vpop.f32.mrf.mxu3  ;;  %v2021_v35 = vpop.f32.mrf.mxu0 }
 0x2fd   : > { %2142 = vst.msk [vmem:[%s3847_s24 + $0xc0] sm:$0xff] %vm240_vm0, %v2093_v62  ;;  %v1721_v54 = vpop.permute.xlu1 %1720  ;;  %v1705_v38 = vpop.permute.xlu0 %1704 }
 0x2fe   : > { %2118 = vst.msk [vmem:[%s3847_s24] sm:$0xff] %vm240_vm0, %v2021_v35  ;;  %v1723_v31 = vpop.permute.xlu2 %1722 }
 0x2ff   : > { %1804 = vst.msk [vmem:[#allocation2 + $0x68] sm:$0xff] %vm1790_vm9, %v1721_v54 }
 0x300   : > { %1846 = vst.msk [vmem:[#allocation2 + $0x68] sm:$0xff] %vm1832_vm10, %v3670_v29 }
 0x301   : > { %1796 = vst.msk [vmem:[#allocation2 + $0x28] sm:$0xff] %vm1790_vm9, %v1705_v38 }
 0x302   : > { %1838 = vst.msk [vmem:[#allocation2 + $0x28] sm:$0xff] %vm1832_vm10, %v3670_v29 }
 0x305   : > { %v1739_v42 = vpop.permute.xlu1 %1738  ;;  %v1562_v46 = vpop.permute.xlu0 %1561 }
 0x306   : > { %1813 = vst.msk [vmem:[#allocation2 + $0xb0] sm:$0xff] %vm1790_vm9, %v1739_v42  ;;  %v1741_v52 = vpop.permute.xlu2 %1740 }
 0x307   : > { %1855 = vst.msk [vmem:[#allocation2 + $0xb0] sm:$0xff] %vm1832_vm10, %v3670_v29  ;;  %v1878_v30 = vld [vmem:[#allocation2 + $0x68] sm:$0xff] }
 0x308   : > { %1628 = vst.msk [vmem:[#allocation2 + $0xf0] sm:$0xff] %vm1597_vm8, %v1562_v46  ;;  %2490 = vmatmul.msk.f32.gmra.mxu1 %vm1907_vm11, %v1878_v30 }
 0x309   : > { %1821 = vst.msk [vmem:[#allocation2 + $0xf0] sm:$0xff] %vm1790_vm9, %v1755_v59  ;;  %v1870_v0 = vld [vmem:[#allocation2 + $0x28] sm:$0xff] }
 0x30a   : > { %1863 = vst.msk [vmem:[#allocation2 + $0xf0] sm:$0xff] %vm1832_vm10, %v3670_v29  ;;  %2482 = vmatmul.msk.f32.gmra.mxu0 %vm1907_vm11, %v1870_v0 }
 0x30c   : > { %v2072_v2 = vpop.f32.mrf.mxu2 }
 0x30d   : > { %2135 = vst.msk [vmem:[%s3847_s24 + $0x88] sm:$0xff] %vm240_vm0, %v2072_v2  ;;  %v1530_v32 = vpop.permute.xlu1 %1529  ;;  %v1514_v5 = vpop.permute.xlu0 %1513 }
 0x30e   : > { %1612 = vst.msk [vmem:[#allocation2 + $0x70] sm:$0xff] %vm1597_vm8, %v1530_v32  ;;  %v1887_v6 = vld [vmem:[#allocation2 + $0xb0] sm:$0xff]  ;;  %v1532_v39 = vpop.permute.xlu2 %1531 }
 0x30f   : > { %1604 = vst.msk [vmem:[#allocation2 + $0x30] sm:$0xff] %vm1597_vm8, %v1514_v5  ;;  %v2024_v7 = vpop.f32.mrf.mxu0  ;;  %2499 = vmatmul.msk.f32.gmra.mxu2 %vm1907_vm11, %v1887_v6 }
 0x310   : > { %2119 = vst.msk [vmem:[%s3847_s24 + $0x8] sm:$0xff] %vm240_vm0, %v2024_v7 }
 0x311   : > { %1805 = vst.msk [vmem:[#allocation2 + $0x70] sm:$0xff] %vm1790_vm9, %v1723_v31  ;;  %v1895_v8 = vld [vmem:[#allocation2 + $0xf0] sm:$0xff] }
 0x312   : > { %1847 = vst.msk [vmem:[#allocation2 + $0x70] sm:$0xff] %vm1832_vm10, %v3670_v29  ;;  %2507 = vmatmul.msk.f32.gmra.mxu3 %vm1907_vm11, %v1895_v8 }
 0x313   : > { %v2096_v9 = vpop.f32.mrf.mxu3  ;;  %1613 = vst.msk [vmem:[#allocation2 + $0x78] sm:$0xff] %vm1597_vm8, %v1532_v39 }
 0x314   : > { %2143 = vst.msk [vmem:[%s3847_s24 + $0xc8] sm:$0xff] %vm240_vm0, %v2096_v9 }
 0x315   : > { %v1707_v10 = vpop.permute.xlu1 %1706  ;;  %v1371_v11 = vpop.permute.xlu0 %1370 }
 0x316   : > { %1797 = vst.msk [vmem:[#allocation2 + $0x30] sm:$0xff] %vm1790_vm9, %v1707_v10 }
 0x317   : > { %1839 = vst.msk [vmem:[#allocation2 + $0x30] sm:$0xff] %vm1832_vm10, %v3670_v29 }
 0x318   : > { %1436 = vst.msk [vmem:[#allocation2 + $0xf8] sm:$0xff] %vm1404_vm7, %v1371_v11 }
 0x319   : > { %v1879_v12 = vld [vmem:[#allocation2 + $0x70] sm:$0xff] }
 0x31a   : > { %2491 = vmatmul.msk.f32.gmra.mxu1 %vm1907_vm11, %v1879_v12 }
 0x31d   : > { %v2048_v48 = vpop.f32.mrf.mxu1  ;;  %v1564_v41 = vpop.permute.xlu1 %1563 }
 0x31e   : > { %2127 = vst.msk [vmem:[%s3847_s24 + $0x48] sm:$0xff] %vm240_vm0, %v2048_v48  ;;  %v1548_v49 = vpop.permute.xlu0 %1547  ;;  %v1871_v13 = vld [vmem:[#allocation2 + $0x30] sm:$0xff] }
 0x31f   : > { %1629 = vst.msk [vmem:[#allocation2 + $0xf8] sm:$0xff] %vm1597_vm8, %v1564_v41  ;;  %2483 = vmatmul.msk.f32.gmra.mxu0 %vm1907_vm11, %v1871_v13 }
 0x320   : > { %1621 = vst.msk [vmem:[#allocation2 + $0xb8] sm:$0xff] %vm1597_vm8, %v1548_v49 }
 0x321   : > { %1814 = vst.msk [vmem:[#allocation2 + $0xb8] sm:$0xff] %vm1790_vm9, %v1741_v52 }
 0x322   : > { %1856 = vst.msk [vmem:[#allocation2 + $0xb8] sm:$0xff] %vm1832_vm10, %v3670_v29 }
 0x325   : > { %v1516_v14 = vpop.permute.xlu1 %1515 }
 0x326   : > { %1605 = vst.msk [vmem:[#allocation2 + $0x38] sm:$0xff] %vm1597_vm8, %v1516_v14  ;;  %v1757_v55 = vpop.permute.xlu0 %1756 }
 0x327   : > { %1822 = vst.msk [vmem:[#allocation2 + $0xf8] sm:$0xff] %vm1790_vm9, %v1757_v55 }
 0x328   : > { %1864 = vst.msk [vmem:[#allocation2 + $0xf8] sm:$0xff] %vm1832_vm10, %v3670_v29 }
 0x329   : > { %v1888_v56 = vld [vmem:[#allocation2 + $0xb8] sm:$0xff] }
 0x32a   : > { %2500 = vmatmul.msk.f32.gmra.mxu2 %vm1907_vm11, %v1888_v56  ;;  %v2099_v15 = vpop.f32.mrf.mxu3 }
 0x32b   : > { %2144 = vst.msk [vmem:[%s3847_s24 + $0xd0] sm:$0xff] %vm240_vm0, %v2099_v15 }
 0x32c   : > { %v2075_v16 = vpop.f32.mrf.mxu2 }
 0x32d   : > { %2136 = vst.msk [vmem:[%s3847_s24 + $0x90] sm:$0xff] %vm240_vm0, %v2075_v16  ;;  %v1725_v4 = vpop.permute.xlu1 %1724 }
 0x32e   : > { %1806 = vst.msk [vmem:[#allocation2 + $0x78] sm:$0xff] %vm1790_vm9, %v1725_v4  ;;  %v1709_v33 = vpop.permute.xlu0 %1708 }
 0x32f   : > { %1848 = vst.msk [vmem:[#allocation2 + $0x78] sm:$0xff] %vm1832_vm10, %v3670_v29  ;;  %v1896_v43 = vld [vmem:[#allocation2 + $0xf8] sm:$0xff] }
 0x330   : > { %1798 = vst.msk [vmem:[#allocation2 + $0x38] sm:$0xff] %vm1790_vm9, %v1709_v33  ;;  %2508 = vmatmul.msk.f32.gmra.mxu3 %vm1907_vm11, %v1896_v43 }
 0x331   : > { %1840 = vst.msk [vmem:[#allocation2 + $0x38] sm:$0xff] %vm1832_vm10, %v3670_v29 }
 0x334   : > { %v2051_v17 = vpop.f32.mrf.mxu1 }
 0x335   : > { %2128 = vst.msk [vmem:[%s3847_s24 + $0x50] sm:$0xff] %vm240_vm0, %v2051_v17 }
 0x336   : > { %v2027_v18 = vpop.f32.mrf.mxu0  ;;  %v1880_v63 = vld [vmem:[#allocation2 + $0x78] sm:$0xff] }
 0x337   : > { %2120 = vst.msk [vmem:[%s3847_s24 + $0x10] sm:$0xff] %vm240_vm0, %v2027_v18  ;;  %2492 = vmatmul.msk.f32.gmra.mxu1 %vm1907_vm11, %v1880_v63 }
 0x338   : > { %v1872_v1 = vld [vmem:[#allocation2 + $0x38] sm:$0xff] }
 0x339   : > { %2484 = vmatmul.msk.f32.gmra.mxu0 %vm1907_vm11, %v1872_v1 }
 0x342   : > { %v2078_v19 = vpop.f32.mrf.mxu2 }
 0x343   : > { %2137 = vst.msk [vmem:[%s3847_s24 + $0x98] sm:$0xff] %vm240_vm0, %v2078_v19 }
 0x345   : > { %v2102_v29 = vpop.f32.mrf.mxu3 }
 0x346   : > { %2145 = vst.msk [vmem:[%s3847_s24 + $0xd8] sm:$0xff] %vm240_vm0, %v2102_v29  ;;  %v2054_v20 = vpop.f32.mrf.mxu1 }
 0x347   : > { %2129 = vst.msk [vmem:[%s3847_s24 + $0x58] sm:$0xff] %vm240_vm0, %v2054_v20 }
 0x34c   : > { %v2030_v3 = vpop.f32.mrf.mxu0 }
 0x34d   : > { %2121 = vst.msk [vmem:[%s3847_s24 + $0x18] sm:$0xff] %vm240_vm0, %v2030_v3 }
 0x35c   : > { %v2081_v58 = vpop.f32.mrf.mxu2 }
 0x35d   : > { %2138 = vst.msk [vmem:[%s3847_s24 + $0xa0] sm:$0xff] %vm240_vm0, %v2081_v58 }
 0x35f   : > { %v2033_v36 = vpop.f32.mrf.mxu0 }
 0x360   : > { %2122 = vst.msk [vmem:[%s3847_s24 + $0x20] sm:$0xff] %vm240_vm0, %v2033_v36 }
 0x363   : > { %v2105_v21 = vpop.f32.mrf.mxu3 }
 0x364   : > { %2146 = vst.msk [vmem:[%s3847_s24 + $0xe0] sm:$0xff] %vm240_vm0, %v2105_v21 }
 0x36d   : > { %v2057_v22 = vpop.f32.mrf.mxu1 }
 0x36e   : > { %2130 = vst.msk [vmem:[%s3847_s24 + $0x60] sm:$0xff] %vm240_vm0, %v2057_v22 }
 0x37a   : > { %v2108_v23 = vpop.f32.mrf.mxu3 }
 0x37b   : > { %2147 = vst.msk [vmem:[%s3847_s24 + $0xe8] sm:$0xff] %vm240_vm0, %v2108_v23 }
 0x37c   : > { %v2084_v24 = vpop.f32.mrf.mxu2 }
 0x37d   : > { %2139 = vst.msk [vmem:[%s3847_s24 + $0xa8] sm:$0xff] %vm240_vm0, %v2084_v24 }
 0x385   : > { %v2060_v45 = vpop.f32.mrf.mxu1 }
 0x386   : > { %2131 = vst.msk [vmem:[%s3847_s24 + $0x68] sm:$0xff] %vm240_vm0, %v2060_v45 }
 0x387   : > { %v2036_v25 = vpop.f32.mrf.mxu0 }
 0x388   : > { %2123 = vst.msk [vmem:[%s3847_s24 + $0x28] sm:$0xff] %vm240_vm0, %v2036_v25 }
 0x392   : > { %v2087_v60 = vpop.f32.mrf.mxu2 }
 0x393   : > { %2140 = vst.msk [vmem:[%s3847_s24 + $0xb0] sm:$0xff] %vm240_vm0, %v2087_v60 }
 0x395   : > { %v2111_v61 = vpop.f32.mrf.mxu3 }
 0x396   : > { %2148 = vst.msk [vmem:[%s3847_s24 + $0xf0] sm:$0xff] %vm240_vm0, %v2111_v61 }
 0x397   : > { %v2063_v28 = vpop.f32.mrf.mxu1 }
 0x398   : > { %2132 = vst.msk [vmem:[%s3847_s24 + $0x70] sm:$0xff] %vm240_vm0, %v2063_v28 }
 0x39c   : > { %v2039_v26 = vpop.f32.mrf.mxu0 }
 0x39d   : > { %2124 = vst.msk [vmem:[%s3847_s24 + $0x30] sm:$0xff] %vm240_vm0, %v2039_v26 }
 0x3ad   : > { %v2090_v27 = vpop.f32.mrf.mxu2 }
 0x3ae   : > { %2141 = vst.msk [vmem:[%s3847_s24 + $0xb8] sm:$0xff] %vm240_vm0, %v2090_v27 }
 0x3b3   : > { %v2114_v34 = vpop.f32.mrf.mxu3 }
 0x3b4   : > { %2149 = vst.msk [vmem:[%s3847_s24 + $0xf8] sm:$0xff] %vm240_vm0, %v2114_v34  ;;  %v2066_v59 = vpop.f32.mrf.mxu1 }
 0x3b5   : > { %2133 = vst.msk [vmem:[%s3847_s24 + $0x78] sm:$0xff] %vm240_vm0, %v2066_v59 }
 0x3b6   : > { %v2042_v40 = vpop.f32.mrf.mxu0 }
 0x3b7   : > { %2125 = vst.msk [vmem:[%s3847_s24 + $0x38] sm:$0xff] %vm240_vm0, %v2042_v40 }
 0x3b8 PF: > { %s12_s11 = sadd.s32 1, %s2599_s11   ;;  %s4069_s9 = smov %s2595_s10 }
 0x3b9   : > { %p9_p5 = scmp.ge.s32.totalorder %s12_s11, 4   ;;  %s4070_s10 = smov %s4072_s12 }
 0x3bb   :  { %11 = sbr.rel (!%p9_p5) target bundleno = 2 (0x2), region = 68 }

</bundles_post_ra>
